<compile_context>
chip_gen: v5e
topology: v5e:2x2
jax: 0.10.0
libtpu: 0.0.40
codegen_flags: <defaults>
</compile_context>

<pallas_src>
from functools import partial

import jax
import jax.numpy as jnp
from jax.experimental import pallas as pl
from jax.experimental.pallas import tpu as pltpu


# ---------------------------------------------------------------------------
# Kernel: one (batch, output-row-tile) block.
#   x_ref    : (WH, WW, Cin)        padded input window (WH = PH+1, WW = Q8+1)
#   skip_ref : (THo, Ws, Cs)        skip tile (pass-through)
#   w_ref    : (4Cin, 4Cout)  [fused]  or  (3, 3, Cin, Cout)  [taps]
#   out_ref  : (THo, Ws, Cout+Cs)
# ---------------------------------------------------------------------------
def _transition_up_kernel(x_ref, skip_ref, w_ref, out_ref, *, cout, r0h, r0w, fused):
    WH, WW, cin = x_ref.shape
    PH, Q8 = WH - 1, WW - 1          # parity-plane extents (Q8 % 8 == 0)
    THo, Ws, _ = skip_ref.shape
    M = PH * Q8
    f32 = jnp.float32

    xw = x_ref[...]
    # Shifted taps of the stride-2 deconv in padded coords ("c"=current, "p"=prev).
    t_cc = xw[1:, 1:, :]
    t_pc = xw[:-1, 1:, :]
    t_cp = xw[1:, :-1, :]
    t_pp = xw[:-1, :-1, :]

    if fused:
        # One fat MXU matmul; parity classes packed along the N (lane) axis.
        x4 = jnp.concatenate([t_cc, t_pc, t_cp, t_pp], axis=-1).reshape(M, 4 * cin)
        r = jnp.dot(x4, w_ref[...], preferred_element_type=f32).reshape(PH, Q8, 4 * cout)
        a_ee = r[:, :, 0 * cout:1 * cout]     # O[2p  , 2q  ]
        a_eo = r[:, :, 1 * cout:2 * cout]     # O[2p  , 2q+1]
        a_oe = r[:, :, 2 * cout:3 * cout]     # O[2p+1, 2q  ]
        a_oo = r[:, :, 3 * cout:4 * cout]     # O[2p+1, 2q+1]
    else:
        # Large-Cin path: no im2col (no 4x lane replication), 9 exact K=Cin dots.
        cc = t_cc.reshape(M, cin)
        pc = t_pc.reshape(M, cin)
        cp = t_cp.reshape(M, cin)
        pp = t_pp.reshape(M, cin)

        def mm(tap, ky, kx):
            return jnp.dot(tap, w_ref[ky, kx], preferred_element_type=f32)

        a_ee = (mm(cc, 0, 0) + mm(pc, 2, 0) + mm(cp, 0, 2) + mm(pp, 2, 2)).reshape(PH, Q8, cout)
        a_eo = (mm(cc, 0, 1) + mm(pc, 2, 1)).reshape(PH, Q8, cout)
        a_oe = (mm(cc, 1, 0) + mm(cp, 1, 2)).reshape(PH, Q8, cout)
        a_oo = mm(cc, 1, 1).reshape(PH, Q8, cout)

    # Sub-pixel interleave (depth-to-space). Channel (lane) axis never reshaped.
    even_rows = jnp.stack([a_ee, a_eo], axis=2).reshape(PH, 2 * Q8, cout)
    odd_rows = jnp.stack([a_oe, a_oo], axis=2).reshape(PH, 2 * Q8, cout)
    full = jnp.stack([even_rows, odd_rows], axis=1).reshape(2 * PH, 2 * Q8, cout)

    # Crop offsets were folded into the window gather, so only a 0/1 slack
    # row/col remains here.  Two direct stores: no concat temp in VMEM.
    out_ref[:, :, :cout] = full[r0h:r0h + THo, r0w:r0w + Ws, :].astype(out_ref.dtype)
    out_ref[:, :, cout:] = skip_ref[...]


# ---------------------------------------------------------------------------
# Helpers
# ---------------------------------------------------------------------------
def _default_vmem_limit():
    cap = 128 * 1024 * 1024
    try:
        info = pltpu.get_tpu_info()
        cap = int(getattr(info, "vmem_capacity_bytes", cap))
    except Exception:
        pass
    # ~48 MiB on v7x (64 MiB physical), ~96 MiB on v5e / v6e (128 MiB physical).
    return min(100 * 1024 * 1024, (cap * 3) // 4)


def _pick_row_tile(hs, est_bytes, budget):
    """Largest output-row tile (divisor of hs, even unless == hs) within budget."""
    if est_bytes(hs) <= budget:
        return hs
    best = None
    for d in range(2, hs, 2):
        if hs % d == 0 and est_bytes(d) <= budget:
            best = d
    if best is not None:
        return best
    # TODO(synk): no even divisor of Hs fits the budget; fall back anyway.
    return 2 if hs % 2 == 0 else hs


# ---------------------------------------------------------------------------
# NHWC core (no layout transposes) and NCHW (PyTorch-layout) wrapper
# ---------------------------------------------------------------------------
def transition_up_pallas_nhwc(x_nhwc, skip_nhwc, w, *, compute_dtype=jnp.bfloat16,
                              row_tile=None, parity_fused=None, vmem_limit_bytes=None):
    """x: (N,Hx,Wx,Cin), skip: (N,Hs,Ws,Cs), w: ConvTranspose2d weight (Cin,Cout,3,3)."""
    N, Hx, Wx, Cin = x_nhwc.shape
    Ns, Hs, Ws, Cs = skip_nhwc.shape
    assert N == Ns
    Cin_w, Cout, kH, kW = w.shape
    assert Cin_w == Cin and kH == 3 and kW == 3
    Hout, Wout = 2 * Hx + 1, 2 * Wx + 1
    assert Hs <= Hout and Ws <= Wout, "skip larger than deconv output"
    # Center-crop policy (canonical Tiramisu); other policies only change these.
    crop_h, crop_w = (Hout - Hs) // 2, (Wout - Ws) // 2
    assert crop_h + Hs <= Hout and crop_w + Ws <= Wout
    r0h, r0w = crop_h % 2, crop_w % 2

    out_dtype = skip_nhwc.dtype
    Ctot = Cout + Cs
    if parity_fused is None:
        # Fuse parity classes along the MXU N axis when it would be under-filled.
        parity_fused = (Cout <= 64) and (Cin <= 128)
    if vmem_limit_bytes is None:
        vmem_limit_bytes = _default_vmem_limit()

    # Parity-plane width (crop folded in), padded to a multiple of 8 so the
    # (P,Q)<->(P*Q) reshapes around the matmul are layout preserving.
    q_start = crop_w // 2
    QW = (r0w + Ws + 1) // 2
    Q8 = ((QW + 7) // 8) * 8
    WW = Q8 + 1

    cdt_bytes = jnp.dtype(compute_dtype).itemsize
    out_bytes = jnp.dtype(out_dtype).itemsize

    def est_bytes(tho):
        ph = (r0h + tho + 1) // 2
        x_win_b = (ph + 1) * WW * Cin * cdt_bytes
        io = 2 * (x_win_b + tho * Ws * Cs * out_bytes + tho * Ws * Ctot * out_bytes)
        mm = ph * Q8 * 4 * Cout * 4
        inter = 3 * (2 * ph) * (2 * Q8) * Cout * 4
        return io + mm + inter + 5 * x_win_b

    if row_tile is None:
        row_tile = _pick_row_tile(Hs, est_bytes, max(8 * 1024 * 1024, vmem_limit_bytes // 3))
    assert Hs % row_tile == 0, "row_tile must divide the skip height"
    assert row_tile == Hs or row_tile % 2 == 0, "multi-tile row tiles must be even"
    nt = Hs // row_tile
    THo = row_tile
    PH = (r0h + THo + 1) // 2
    WH = PH + 1

    # Pad once in HBM (cast folded in) and gather overlapping row windows
    # (1-row halo per tile; the duplicated row is negligible HBM).
    p_starts = [(crop_h + t * THo) // 2 for t in range(nt)]
    need_rows = p_starts[-1] + WH
    need_cols = q_start + WW
    pad_back_h = max(1, need_rows - (Hx + 1))
    pad_back_w = max(1, need_cols - (Wx + 1))
    xpad = jnp.pad(x_nhwc.astype(compute_dtype),
                   ((0, 0), (1, pad_back_h), (1, pad_back_w), (0, 0)))
    x_win = jnp.stack(
        [xpad[:, p0:p0 + WH, q_start:q_start + WW, :] for p0 in p_starts], axis=1
    )  # (N, nt, WH, WW, Cin)

    # Weight packing.
    def wk(ky, kx):
        return w[:, :, ky, kx].astype(compute_dtype)          # (Cin, Cout)

    if parity_fused:
        z = jnp.zeros((Cin, Cout), compute_dtype)
        col_ee = jnp.concatenate([wk(0, 0), wk(2, 0), wk(0, 2), wk(2, 2)], axis=0)
        col_eo = jnp.concatenate([wk(0, 1), wk(2, 1), z, z], axis=0)
        col_oe = jnp.concatenate([wk(1, 0), z, wk(1, 2), z], axis=0)
        col_oo = jnp.concatenate([wk(1, 1), z, z, z], axis=0)
        w_arg = jnp.concatenate([col_ee, col_eo, col_oe, col_oo], axis=1)   # (4Cin,4Cout)
        w_spec = pl.BlockSpec((4 * Cin, 4 * Cout), lambda n, t: (0, 0))
    else:
        w_arg = jnp.transpose(w, (2, 3, 0, 1)).astype(compute_dtype)        # (3,3,Cin,Cout)
        w_spec = pl.BlockSpec((3, 3, Cin, Cout), lambda n, t: (0, 0, 0, 0))

    kernel = partial(_transition_up_kernel, cout=Cout, r0h=r0h, r0w=r0w, fused=parity_fused)

    return pl.pallas_call(
        kernel,
        out_shape=jax.ShapeDtypeStruct((N, Hs, Ws, Ctot), out_dtype),
        grid=(N, nt),
        in_specs=[
            pl.BlockSpec((None, None, WH, WW, Cin), lambda n, t: (n, t, 0, 0, 0)),
            pl.BlockSpec((None, THo, Ws, Cs), lambda n, t: (n, t, 0, 0)),
            w_spec,
        ],
        out_specs=pl.BlockSpec((None, THo, Ws, Ctot), lambda n, t: (n, t, 0, 0)),
        compiler_params=pltpu.CompilerParams(
            dimension_semantics=("parallel", "parallel"),
            vmem_limit_bytes=vmem_limit_bytes,
        ),
    )(x_win, skip_nhwc, w_arg)


def transition_up_pallas(x_nchw, skip_nchw, w, **kwargs):
    """PyTorch-layout wrapper: x (N,Cin,Hx,Wx), skip (N,Cs,Hs,Ws) -> NCHW output."""
    x_nhwc = jnp.transpose(x_nchw, (0, 2, 3, 1))
    skip_nhwc = jnp.transpose(skip_nchw, (0, 2, 3, 1))
    y_nhwc = transition_up_pallas_nhwc(x_nhwc, skip_nhwc, w, **kwargs)
    return jnp.transpose(y_nhwc, (0, 3, 1, 2))


class TransitionUpPallas:
    """Mirrors TransitionUp(in_channels, out_channels): ConvTranspose2d(k=3, s=2,
    bias=False) + center-crop-to-skip + channel concat with skip."""

    def __init__(self, in_channels, out_channels, key=None, compute_dtype=jnp.bfloat16):
        key = jax.random.PRNGKey(0) if key is None else key
        fan = in_channels * 9
        # PyTorch ConvTranspose2d weight layout: (Cin, Cout, kH, kW), bias=False.
        self.weight = (1.0 / jnp.sqrt(fan)) * jax.random.normal(
            key, (in_channels, out_channels, 3, 3), jnp.float32)
        self.compute_dtype = compute_dtype

    def __call__(self, x_nchw, skip_nchw, **kwargs):
        return transition_up_pallas(x_nchw, skip_nchw, self.weight,
                                    compute_dtype=self.compute_dtype, **kwargs)


# ---------------------------------------------------------------------------
# Pure-JAX reference (direct transcription of ConvTranspose2d + crop + concat)
# ---------------------------------------------------------------------------
def _reference_forward(x_nchw, skip_nchw, w):
    N, Cin, Hx, Wx = x_nchw.shape
    Cout = w.shape[1]
    Hout, Wout = 2 * Hx + 1, 2 * Wx + 1
    out = jnp.zeros((N, Cout, Hout, Wout), jnp.float32)
    for ky in range(3):
        for kx in range(3):
            contrib = jnp.einsum("nchw,cd->ndhw", x_nchw, w[:, :, ky, kx])
            out = out.at[:, :, ky:ky + 2 * Hx:2, kx:kx + 2 * Wx:2].add(contrib)
    Hs, Ws = skip_nchw.shape[2], skip_nchw.shape[3]
    oh, ow = (Hout - Hs) // 2, (Wout - Ws) // 2
    cropped = out[:, :, oh:oh + Hs, ow:ow + Ws]
    return jnp.concatenate([cropped, skip_nchw], axis=1)


if __name__ == "__main__":
    key = jax.random.PRNGKey(0)
    kx_, ks_, kw_, kx2_, ks2_ = jax.random.split(key, 5)

    # Shapes consistent with the module: skip is the pre-pooling feature map,
    # x the post-pooling one; the stride-2 deconv upsamples x back to skip size.
    N, Cin, Hx, Wx = 2, 4, 8, 8
    Cout, Cs, Hs, Ws = 4, 4, 16, 16

    x = jax.random.normal(kx_, (N, Cin, Hx, Wx), jnp.float32)
    skip = jax.random.normal(ks_, (N, Cs, Hs, Ws), jnp.float32)

    module = TransitionUpPallas(Cin, Cout, key=kw_)
    w = module.weight
    y_ref = jax.block_until_ready(_reference_forward(x, skip, w))

    # 1) Default path: fused parity matmul, single row tile, bf16 MXU inputs.
    y1 = jax.block_until_ready(module(x, skip))
    assert y1.shape == (N, Cout + Cs, Hs, Ws), y1.shape
    assert float(jnp.max(jnp.abs(y1 - y_ref))) < 5e-2

    # 2) Row-tiled grid (output-row tiles with a 1-row input halo), 2 tiles.
    y2 = jax.block_until_ready(transition_up_pallas(x, skip, w, row_tile=8))
    assert float(jnp.max(jnp.abs(y2 - y_ref))) < 5e-2

    # 3) Large-Cin style path: no im2col, 9 accumulating K=Cin matmuls.
    y3 = jax.block_until_ready(transition_up_pallas(x, skip, w, parity_fused=False))
    assert float(jnp.max(jnp.abs(y3 - y_ref))) < 5e-2

    # 4) f32 compute path (tighter numerical parity with the PyTorch-style ref).
    y4 = jax.block_until_ready(transition_up_pallas(x, skip, w, compute_dtype=jnp.float32))
    assert float(jnp.max(jnp.abs(y4 - y_ref))) < 2e-2

    # 5) Odd center-crop offsets (crop_h = crop_w = 1) + multi-tile grid.
    Hs2 = Ws2 = 14
    x2 = jax.random.normal(kx2_, (N, Cin, Hx, Wx), jnp.float32)
    skip2 = jax.random.normal(ks2_, (N, Cs, Hs2, Ws2), jnp.float32)
    y5 = jax.block_until_ready(transition_up_pallas(x2, skip2, w, row_tile=2))
    y5_ref = _reference_forward(x2, skip2, w)
    assert y5.shape == (N, Cout + Cs, Hs2, Ws2), y5.shape
    assert float(jnp.max(jnp.abs(y5 - y5_ref))) < 5e-2

    print("KERNEL_OK")
</pallas_src>

<mosaic_0001>
module attributes {stable_mosaic.version = 11 : i64} {
  func.func @_transition_up_kernel(%arg0: i32, %arg1: i32, %arg2: memref<1x1x9x9x4xbf16, #tpu.memory_space<vmem>>, %arg3: memref<1x16x16x4xf32, #tpu.memory_space<vmem>>, %arg4: memref<16x16xbf16, #tpu.memory_space<vmem>>, %arg5: memref<1x16x16x8xf32, #tpu.memory_space<vmem>>) attributes {dimension_semantics = [#tpu.dimension_semantics<parallel>, #tpu.dimension_semantics<parallel>], iteration_bounds = array<i64: 2, 1>, scalar_prefetch = 0 : i64, scratch_operands = 0 : i64, tpu.core_type = #tpu.core_type<tc>, window_params = [{transform_indices = @transform_0, window_bounds = array<i64: 1, 1, 9, 9, 4>}, {transform_indices = @transform_1, window_bounds = array<i64: 1, 16, 16, 4>}, {pipeline_mode = #tpu.pipeline_mode<synchronous>, transform_indices = @transform_2, window_bounds = array<i64: 16, 16>}, {transform_indices = @transform_3, window_bounds = array<i64: 1, 16, 16, 8>}]} {
    %c0 = arith.constant 0 : index
    %c0_0 = arith.constant 0 : index
    %c0_1 = arith.constant 0 : index
    %c0_2 = arith.constant 0 : index
    %c0_3 = arith.constant 0 : index
    %0 = vector.load %arg2[%c0, %c0_0, %c0_1, %c0_2, %c0_3] : memref<1x1x9x9x4xbf16, #tpu.memory_space<vmem>>, vector<1x1x9x9x4xbf16>
    %1 = vector.shape_cast %0 : vector<1x1x9x9x4xbf16> to vector<9x9x4xbf16>
    %2 = vector.extract_strided_slice %1 {offsets = [1, 1, 0], sizes = [8, 8, 4], strides = [1, 1, 1]} : vector<9x9x4xbf16> to vector<8x8x4xbf16>
    %3 = vector.extract_strided_slice %1 {offsets = [0, 1, 0], sizes = [8, 8, 4], strides = [1, 1, 1]} : vector<9x9x4xbf16> to vector<8x8x4xbf16>
    %4 = vector.extract_strided_slice %1 {offsets = [1, 0, 0], sizes = [8, 8, 4], strides = [1, 1, 1]} : vector<9x9x4xbf16> to vector<8x8x4xbf16>
    %5 = vector.extract_strided_slice %1 {offsets = [0, 0, 0], sizes = [8, 8, 4], strides = [1, 1, 1]} : vector<9x9x4xbf16> to vector<8x8x4xbf16>
    %6 = tpu.concatenate %2, %3, %4, %5 in 2 : vector<8x8x4xbf16>, vector<8x8x4xbf16>, vector<8x8x4xbf16>, vector<8x8x4xbf16> -> vector<8x8x16xbf16>
    %7 = vector.shape_cast %6 : vector<8x8x16xbf16> to vector<64x16xbf16>
    %c0_4 = arith.constant 0 : index
    %c0_5 = arith.constant 0 : index
    %8 = vector.load %arg4[%c0_4, %c0_5] : memref<16x16xbf16, #tpu.memory_space<vmem>>, vector<16x16xbf16>
    %cst = arith.constant dense<0.000000e+00> : vector<64x16xf32>
    %9 = tpu.matmul %7, %8, %cst {dimension_numbers = #tpu.dot_dimension_numbers<[1], [0], [0], [1], [0, 0, 1, 1], [], []>} : vector<64x16xbf16>, vector<16x16xbf16>, vector<64x16xf32> -> vector<64x16xf32>
    %10 = vector.shape_cast %9 : vector<64x16xf32> to vector<8x8x16xf32>
    %11 = vector.extract_strided_slice %10 {offsets = [0, 0, 0], sizes = [8, 8, 4], strides = [1, 1, 1]} : vector<8x8x16xf32> to vector<8x8x4xf32>
    %12 = vector.extract_strided_slice %10 {offsets = [0, 0, 4], sizes = [8, 8, 4], strides = [1, 1, 1]} : vector<8x8x16xf32> to vector<8x8x4xf32>
    %13 = vector.extract_strided_slice %10 {offsets = [0, 0, 8], sizes = [8, 8, 4], strides = [1, 1, 1]} : vector<8x8x16xf32> to vector<8x8x4xf32>
    %14 = vector.extract_strided_slice %10 {offsets = [0, 0, 12], sizes = [8, 8, 4], strides = [1, 1, 1]} : vector<8x8x16xf32> to vector<8x8x4xf32>
    %15 = vector.shape_cast %11 : vector<8x8x4xf32> to vector<8x8x1x4xf32>
    %16 = vector.shape_cast %12 : vector<8x8x4xf32> to vector<8x8x1x4xf32>
    %17 = tpu.concatenate %15, %16 in 2 : vector<8x8x1x4xf32>, vector<8x8x1x4xf32> -> vector<8x8x2x4xf32>
    %18 = vector.shape_cast %17 : vector<8x8x2x4xf32> to vector<8x16x4xf32>
    %19 = vector.shape_cast %13 : vector<8x8x4xf32> to vector<8x8x1x4xf32>
    %20 = vector.shape_cast %14 : vector<8x8x4xf32> to vector<8x8x1x4xf32>
    %21 = tpu.concatenate %19, %20 in 2 : vector<8x8x1x4xf32>, vector<8x8x1x4xf32> -> vector<8x8x2x4xf32>
    %22 = vector.shape_cast %21 : vector<8x8x2x4xf32> to vector<8x16x4xf32>
    %23 = vector.shape_cast %18 : vector<8x16x4xf32> to vector<8x1x16x4xf32>
    %24 = vector.shape_cast %22 : vector<8x16x4xf32> to vector<8x1x16x4xf32>
    %25 = tpu.concatenate %23, %24 in 1 : vector<8x1x16x4xf32>, vector<8x1x16x4xf32> -> vector<8x2x16x4xf32>
    %26 = vector.shape_cast %25 : vector<8x2x16x4xf32> to vector<16x16x4xf32>
    %c0_6 = arith.constant 0 : index
    %c0_7 = arith.constant 0 : index
    %c0_8 = arith.constant 0 : index
    %c0_9 = arith.constant 0 : index
    %27 = vector.load %arg5[%c0_6, %c0_7, %c0_8, %c0_9] : memref<1x16x16x8xf32, #tpu.memory_space<vmem>>, vector<1x16x16x4xf32>
    %28 = vector.shape_cast %27 : vector<1x16x16x4xf32> to vector<16x16x4xf32>
    %29 = vector.shape_cast %26 : vector<16x16x4xf32> to vector<1x16x16x4xf32>
    tpu.vector_store %arg5[%c0_6, %c0_7, %c0_8, %c0_9], %29 {strides = array<i32>} : memref<1x16x16x8xf32, #tpu.memory_space<vmem>>, vector<1x16x16x4xf32>,
    %c0_10 = arith.constant 0 : index
    %c0_11 = arith.constant 0 : index
    %c0_12 = arith.constant 0 : index
    %c0_13 = arith.constant 0 : index
    %30 = vector.load %arg3[%c0_10, %c0_11, %c0_12, %c0_13] : memref<1x16x16x4xf32, #tpu.memory_space<vmem>>, vector<1x16x16x4xf32>
    %31 = vector.shape_cast %30 : vector<1x16x16x4xf32> to vector<16x16x4xf32>
    %c0_14 = arith.constant 0 : index
    %c0_15 = arith.constant 0 : index
    %c0_16 = arith.constant 0 : index
    %c4 = arith.constant 4 : index
    %32 = vector.load %arg5[%c0_14, %c0_15, %c0_16, %c4] : memref<1x16x16x8xf32, #tpu.memory_space<vmem>>, vector<1x16x16x4xf32>
    %33 = vector.shape_cast %32 : vector<1x16x16x4xf32> to vector<16x16x4xf32>
    %34 = vector.shape_cast %31 : vector<16x16x4xf32> to vector<1x16x16x4xf32>
    tpu.vector_store %arg5[%c0_14, %c0_15, %c0_16, %c4], %34 {strides = array<i32>} : memref<1x16x16x8xf32, #tpu.memory_space<vmem>>, vector<1x16x16x4xf32>,
    return
  }
  func.func @transform_0(%arg0: i32, %arg1: i32) -> (i32, i32, i32, i32, i32) {
    %c0_i32 = arith.constant 0 : i32
    %c0_i32_0 = arith.constant 0 : i32
    %c0_i32_1 = arith.constant 0 : i32
    %c0_i32_2 = arith.constant 0 : i32
    return %arg0, %arg1, %c0_i32, %c0_i32_0, %c0_i32_1 : i32, i32, i32, i32, i32
  }
  func.func @transform_1(%arg0: i32, %arg1: i32) -> (i32, i32, i32, i32) {
    %c0_i32 = arith.constant 0 : i32
    %c0_i32_0 = arith.constant 0 : i32
    %c0_i32_1 = arith.constant 0 : i32
    return %arg0, %arg1, %c0_i32, %c0_i32_0 : i32, i32, i32, i32
  }
  func.func @transform_2(%arg0: i32, %arg1: i32) -> (i32, i32) {
    %c0_i32 = arith.constant 0 : i32
    %c0_i32_0 = arith.constant 0 : i32
    %c0_i32_1 = arith.constant 0 : i32
    return %c0_i32, %c0_i32_0 : i32, i32
  }
  func.func @transform_3(%arg0: i32, %arg1: i32) -> (i32, i32, i32, i32) {
    %c0_i32 = arith.constant 0 : i32
    %c0_i32_0 = arith.constant 0 : i32
    %c0_i32_1 = arith.constant 0 : i32
    return %arg0, %arg1, %c0_i32, %c0_i32_0 : i32, i32, i32, i32
  }
}

</mosaic_0001>

<bundles_post_ra>
// kernel: tpu_custom_call.1
= control target key start
LH: loop header
LB: loop body
LE: loop exit
PB: predicated region body
PF: predicated region fallthrough
CT: control target
= control target key end

     0   :  { %s1988_s12 = smov 0   ;;  %s1990_s13 = smov 0   ;;  %s3395_s0 = inlined_call_operand.vmem [shape: bf16[2,1,9,9,4], index: 0, kind: input, shape index: {}]   ;;  %s3396_s1 = inlined_call_operand.vmem [shape: f32[2,16,16,4], index: 1, kind: input, shape index: {}]   ;;  %s3397_s2 = inlined_call_operand.vmem [shape: bf16[16,16], index: 2, kind: input, shape index: {}]   ;;  %s3398_s3 = inlined_call_operand.vmem [shape: f32[2,16,16,8], index: 3, kind: output, shape index: {}]  }
   0x1   :  { %s1992_s14 = smov 0  }
   0x2 LB: > { %s25_s15 = sadd.s32 1, %s1957_s13  ;;  %p1887_p0 = scmp.ge.s32.totalorder %s1961_s14, 1  ;;  %s1961_s14 = sphi %s1992_s14, %s13_s14   ;;  %s1957_s13 = sphi %s1990_s13, %s3506_s13   ;;  %s1953_s12 = sphi %s1988_s12, %s3505_s12  }
   0x3   : > { %p27_p1 = scmp.ge.s32.totalorder %s25_s15, 2  ;;  %p175_p2 = scmp.lt.s32.totalorder %s1961_s14, 3 }
   0x5   : > { %s3508_s15 = smov (%p27_p1, %s25_s15), 0  ;;  %p176_p3 = pnand %p1887_p0, %p175_p2 }
   0x7   : > { %179 = sbr.rel (%p176_p3) target bundleno = 889 (0x379), region = 32 }
   0xc   : > { %p218_p4 = scmp.lt.s32.totalorder %s1953_s12, 1  ;;  %s1963_s20 = smov 4   ;;  %vm433_vm0 = vcmask 31744   ;;  %vm475_vm1 = vcmask 97280   ;;  %vm458_vm2 = vcmask 64512   ;;  %vm667_vm6 = vcmask 130048  }
   0xd   : > { %s1964_s21 = smov 8   ;;  %s1965_s22 = smov 12   ;;  %vm532_vm3 = vsmask.f32 3328  ;;  %vm533_vm4 = vsmask.f32 7440 }
   0xe   : > { %s3510_s12 = smov (!%p218_p4, %s1953_s12), 1  ;;  %vm2139_vm5 = vmor %vm532_vm3, %vm533_vm4  ;;  %s1966_s29 = smov 124   ;;  %vm1085_vm7 = vcmask 1040384   ;;  %vm1733_vm8 = vcmask 64544  }
   0xf   : > { %s1909_s16 = smul.u32 72, %s3510_s12  ;;  %s1903_s25 = sshll.u32 %s3510_s12, 8 }
  0x10   : > { %s2112_s28 = scalar_lea.vmem %s3396_s1, %s1903_s25  ;;  %s2455_s5 = scalar_lea.vmem %s3398_s3, %s1903_s25 }
  0x11   : > { %s2012_s19 = scalar_lea.vmem %s3395_s0, %s1909_s16  ;;  %s1967_s6 = smov 120  }
  0x12   : > { %v254_v0 = vld [vmem:[%s2012_s19 + $0x10] sm:$0xf]  ;;  %v255_v1 = vld [vmem:[%s2012_s19 + $0x14] sm:$0x1]  ;;  %v250_v2 = vld [vmem:[%s2012_s19] sm:$0xf] }
  0x13   : > { %v286_v3 = vunpack.c.l.b16 %v254_v0  ;;  %v287_v4 = vunpack.c.l.b16 %v255_v1  ;;  %v251_v5 = vld [vmem:[%s2012_s19 + $0x4] sm:$0x1]  ;;  %v2018_v6 = vunpack.c.l.b16 %v250_v2  ;;  %v256_v8 = vld [vmem:[%s2012_s19 + $0x18] sm:$0xf]  ;;  %v257_v9 = vld [vmem:[%s2012_s19 + $0x1c] sm:$0x1] }
  0x14   : > { %v311_v7 = vunpack.c.l.b16 %v251_v5  ;;  %v258_v10 = vld [vmem:[%s2012_s19 + $0x20] sm:$0xf]  ;;  %v252_v12 = vld [vmem:[%s2012_s19 + $0x8] sm:$0xf]  ;;  %v253_v13 = vld [vmem:[%s2012_s19 + $0xc] sm:$0x1]  ;;  %v288_v17 = vunpack.c.l.b16 %v256_v8  ;;  %v289_v18 = vunpack.c.l.b16 %v257_v9 }
  0x15   : > { %v2023_v11 = vpack.c.b16 %v287_v4, %v286_v3  ;;  %v259_v14 = vld [vmem:[%s2012_s19 + $0x24] sm:$0x1]  ;;  %v290_v16 = vunpack.c.l.b16 %v258_v10  ;;  %v284_v20 = vunpack.c.l.b16 %v252_v12  ;;  %v285_v21 = vunpack.c.l.b16 %v253_v13  ;;  %v260_v22 = vld [vmem:[%s2012_s19 + $0x28] sm:$0xf]  ;;  %v261_v23 = vld [vmem:[%s2012_s19 + $0x2c] sm:$0x1] }
  0x16   : > { %v312_v15 = vpack.c.b16 %v311_v7, %v2018_v6  ;;  %v291_v19 = vunpack.c.l.b16 %v259_v14  ;;  %v2036_v25 = vpack.c.b16 %v289_v18, %v288_v17  ;;  %v264_v26 = vld [vmem:[%s2012_s19 + $0x38] sm:$0xf]  ;;  %v292_v27 = vunpack.c.l.b16 %v260_v22  ;;  %v265_v31 = vld [vmem:[%s2012_s19 + $0x3c] sm:$0x1]  ;;  %v262_v32 = vld [vmem:[%s2012_s19 + $0x30] sm:$0xf] }
  0x17   : > { %317 = vrot.lane.b32.xlu1 %v2023_v11, %s1963_s20  ;;  %v293_v28 = vunpack.c.l.b16 %v261_v23  ;;  %v329_v29 = vpack.c.b16 %v284_v20, %v284_v20  ;;  %v2041_v30 = vpack.c.b16 %v285_v21, %v284_v20  ;;  %v263_v33 = vld [vmem:[%s2012_s19 + $0x34] sm:$0x1]  ;;  %v296_v34 = vunpack.c.l.b16 %v264_v26  ;;  %v266_v57 = vld [vmem:[%s2012_s19 + $0x40] sm:$0xf] }
  0x18   : > { %313 = vrot.lane.b32.xlu0 %v312_v15, %s1963_s20  ;;  %v2034_v24 = vpack.c.b16 %v291_v19, %v290_v16  ;;  %v297_v35 = vunpack.c.l.b16 %v265_v31  ;;  %v331_v37 = vpack.c.b16 %v288_v17, %v288_v17  ;;  %v330_v39 = vpack.c.b16 %v286_v3, %v286_v3 }
  0x19   : > { %v2048_v36 = vpack.c.b16 %v293_v28, %v292_v27  ;;  %v338_v38 = vshrl.u32 %v329_v29, 16  ;;  %v294_v40 = vunpack.c.l.b16 %v262_v32  ;;  %v295_v41 = vunpack.c.l.b16 %v263_v33 }
  0x1a   : > { %321 = vrot.lane.b32.xlu2 %v2034_v24, %s1963_s20  ;;  %v332_v42 = vpack.c.b16 %v290_v16, %v290_v16  ;;  %v2052_v43 = vpack.c.b16 %v297_v35, %v296_v34  ;;  %v352_v44 = vshrl.u32 %v331_v37, 16  ;;  %v341_v46 = vshll.u32 %v329_v29, 16 }
  0x1b   : > { %v340_v45 = vrot.slane %v338_v38, 7  ;;  %v2056_v47 = vpack.c.b16 %v295_v41, %v294_v40  ;;  %v345_v48 = vshrl.u32 %v330_v39, 16  ;;  %v334_v49 = vpack.c.b16 %v294_v40, %v294_v40  ;;  %v1905_v41 = vld [vmem:[%s3397_s2] sm:$0xff] }
  0x1c   : > { %v354_v50 = vrot.slane %v352_v44, 7  ;;  %v355_v51 = vshll.u32 %v331_v37, 16  ;;  %v359_v53 = vshrl.u32 %v332_v42, 16  ;;  %v348_v55 = vshll.u32 %v330_v39, 16  ;;  %687 = vmatpush.bf16.msra.mxu0 %v1905_v41  ;;  %1906 = vmatpush.bf16.msra.mxu1 %v1905_v41 }
  0x1d   : > { %v343_v52 = vor.u32 %v341_v46, %v340_v45  ;;  %v347_v54 = vrot.slane %v345_v48, 7  ;;  %v333_v56 = vpack.c.b16 %v292_v27, %v292_v27  ;;  %v373_v58 = vshrl.u32 %v334_v49, 16  ;;  %1907 = vmatpush.bf16.msra.mxu2 %v1905_v41  ;;  %1908 = vmatpush.bf16.msra.mxu3 %v1905_v41 }
  0x1e   : > { %v357_v59 = vor.u32 %v355_v51, %v354_v50  ;;  %v361_v60 = vrot.slane %v359_v53, 7  ;;  %v362_v61 = vshll.u32 %v332_v42, 16  ;;  %v335_v62 = vpack.c.b16 %v296_v34, %v296_v34  ;;  %v267_v50 = vld [vmem:[%s2012_s19 + $0x44] sm:$0x1] }
  0x1f   : > { %319 = vrot.lane.b32.xlu1 %v2036_v25, %s1963_s20  ;;  %v350_v63 = vor.u32 %v348_v55, %v347_v54  ;;  %v366_v0 = vshrl.u32 %v333_v56, 16  ;;  %v2064_v1 = vunpack.c.l.b16 %v266_v57  ;;  %v409_v2 = vpack.c.b16 %v2018_v6, %v2018_v6 }
  0x20   : > { %315 = vrot.lane.b32.xlu0 %v2041_v30, %s1963_s20  ;;  %v375_v3 = vrot.slane %v373_v58, 7  ;;  %v376_v4 = vshll.u32 %v334_v49, 16  ;;  %v364_v5 = vor.u32 %v362_v61, %v361_v60  ;;  %v380_v7 = vshrl.u32 %v335_v62, 16 }
  0x21   : > { %v368_v8 = vrot.slane %v366_v0, 7  ;;  %v369_v9 = vshll.u32 %v333_v56, 16  ;;  %v336_v10 = vpack.c.b16 %v2064_v1, %v2064_v1  ;;  %v411_v13 = vshrl.u32 %v409_v2, 16 }
  0x22   : > { %323 = vrot.lane.b32.xlu2 %v2048_v36, %s1963_s20  ;;  %v378_v12 = vor.u32 %v376_v4, %v375_v3  ;;  %v382_v14 = vrot.slane %v380_v7, 7  ;;  %v383_v15 = vshll.u32 %v335_v62, 16  ;;  %v414_v18 = vshll.u32 %v409_v2, 16 }
  0x23   : > { %v371_v6 = vor.u32 %v369_v9, %v368_v8  ;;  %v387_v16 = vshrl.u32 %v336_v10, 16  ;;  %v413_v17 = vrot.slane %v411_v13, 7  ;;  %v390_v21 = vshll.u32 %v336_v10, 16 }
  0x24   : > { %v385_v19 = vor.u32 %v383_v15, %v382_v14  ;;  %v299_v54 = vunpack.c.l.b16 %v267_v50 }
  0x25   : > { %v389_v20 = vrot.slane %v387_v16, 7  ;;  %v416_v22 = vor.u32 %v414_v18, %v413_v17 }
  0x26   : > { %v307_v62 = vpack.c.b16 %v299_v54, %v2064_v1 }
  0x27   : > { %327 = vrot.lane.b32.xlu1 %v2052_v43, %s1963_s20  ;;  %v392_v23 = vor.u32 %v390_v21, %v389_v20 }
  0x28   : > { %325 = vrot.lane.b32.xlu0 %v2056_v47, %s1963_s20 }
  0x2a   : > { %393 = vrot.lane.b32.xlu2 %v343_v52, %s1964_s21 }
  0x2f   : > { %397 = vrot.lane.b32.xlu1 %v357_v59, %s1964_s21 }
  0x30   : > { %395 = vrot.lane.b32.xlu0 %v350_v63, %s1964_s21 }
  0x32   : > { %399 = vrot.lane.b32.xlu2 %v364_v5, %s1964_s21 }
  0x37   : > { %403 = vrot.lane.b32.xlu1 %v378_v12, %s1964_s21 }
  0x38   : > { %401 = vrot.lane.b32.xlu0 %v371_v6, %s1964_s21 }
  0x3a   : > { %405 = vrot.lane.b32.xlu2 %v385_v19, %s1964_s21 }
  0x3f   : > { %417 = vrot.lane.b32.xlu1 %v416_v22, %s1965_s22 }
  0x40   : > { %407 = vrot.lane.b32.xlu0 %v392_v23, %s1964_s21 }
  0x42   : > { %419 = vrot.lane.b32.xlu2 %v343_v52, %s1965_s22 }
  0x47   : > { %423 = vrot.lane.b32.xlu1 %v357_v59, %s1965_s22 }
  0x48   : > { %421 = vrot.lane.b32.xlu0 %v350_v63, %s1965_s22 }
  0x4a   : > { %425 = vrot.lane.b32.xlu2 %v364_v5, %s1965_s22 }
  0x4f   : > { %429 = vrot.lane.b32.xlu1 %v378_v12, %s1965_s22 }
  0x50   : > { %427 = vrot.lane.b32.xlu0 %v371_v6, %s1965_s22 }
  0x52   : > { %431 = vrot.lane.b32.xlu2 %v385_v19, %s1965_s22 }
  0x74   : > { %v322_v26 = vpop.permute.xlu2 %321 }
  0x75   : > { %v448_v53 = vsel %vm433_vm0, %v2048_v36, %v322_v26 }
  0x7c   : > { %v324_v27 = vpop.permute.xlu2 %323 }
  0x7d   : > { %v451_v36 = vsel %vm433_vm0, %v2056_v47, %v324_v27  ;;  %v1573_v27 = vld [vmem:[%s2112_s28] sm:$0xff] }
  0x7e   : > { %1637 = vrot.lane.b32.xlu2 %v1573_v27, %s1963_s20 }
  0x84   : > { %v394_v28 = vpop.permute.xlu2 %393 }
  0x89   : > { %v2077_v29 = vpop.permute.xlu1 %317 }
  0x8a   : > { %v314_v31 = vpop.permute.xlu0 %313 }
  0x8b   : > { %v436_v61 = vsel %vm433_vm0, %v2041_v30, %v314_v31 }
  0x8c   : > { %v2079_v32 = vpop.permute.xlu2 %399  ;;  %v460_v3 = vsel %vm458_vm2, %v436_v61, %v394_v28 }
  0x91   : > { %v320_v33 = vpop.permute.xlu1 %319 }
  0x92   : > { %v316_v34 = vpop.permute.xlu0 %315  ;;  %v445_v14 = vsel %vm433_vm0, %v2034_v24, %v320_v33  ;;  %v1574_v24 = vld [vmem:[%s2112_s28 + $0x8] sm:$0xff] }
  0x93   : > { %v439_v42 = vsel %vm433_vm0, %v2023_v11, %v316_v34  ;;  %1639 = vrot.lane.b32.xlu0 %v1574_v24, %s1963_s20  ;;  %v466_v34 = vsel %vm458_vm2, %v445_v14, %v2079_v32 }
  0x94   : > { %v2081_v35 = vpop.permute.xlu2 %405 }
  0x99   : > { %v328_v37 = vpop.permute.xlu1 %327 }
  0x9a   : > { %v326_v38 = vpop.permute.xlu0 %325  ;;  %v457_v47 = vsel %vm433_vm0, %v307_v62, %v328_v37 }
  0x9b   : > { %v454_v15 = vsel %vm433_vm0, %v2052_v43, %v326_v38  ;;  %v442_v43 = vsel %vm433_vm0, %v2036_v25, %v2077_v29 }
  0x9c   : > { %v420_v39 = vpop.permute.xlu2 %419  ;;  %v472_v37 = vsel %vm458_vm2, %v454_v15, %v2081_v35 }
  0xa1   : > { %v2083_v40 = vpop.permute.xlu1 %397 }
  0xa2   : > { %v396_v44 = vpop.permute.xlu0 %395  ;;  %v464_v25 = vsel %vm458_vm2, %v442_v43, %v2083_v40 }
  0xa3   : > { %v462_v45 = vsel %vm458_vm2, %v439_v42, %v396_v44 }
  0xa4   : > { %v479_v46 = vsel %vm475_vm1, %v462_v45, %v420_v39  ;;  %v426_v51 = vpop.permute.xlu2 %425 }
  0xa5   : > { %v502_v48 = vunpack.c.l.b16 %v479_v46  ;;  %v503_v59 = vunpack.c.h.b16 %v479_v46 }
  0xa7   : > { %v518_v49 = vpack.c.b16 %v502_v48, %v502_v48  ;;  %v519_v4 = vpack.c.b16 %v503_v59, %v503_v59 }
  0xa9   : > { %v2093_v52 = vpop.permute.xlu1 %403  ;;  %v550_v55 = vshrl.u32 %v518_v49, 16  ;;  %v553_v56 = vshll.u32 %v518_v49, 16  ;;  %v559_v17 = vshll.u32 %v519_v4, 16 }
  0xaa   : > { %v402_v11 = vpop.permute.xlu0 %401  ;;  %v470_v32 = vsel %vm458_vm2, %v451_v36, %v2093_v52 }
  0xab   : > { %v468_v57 = vsel %vm458_vm2, %v448_v53, %v402_v11  ;;  %v552_v63 = vrot.slane %v550_v55, 4  ;;  %v555_v0 = vrot.slane %v553_v56, 5  ;;  %v561_v29 = vrot.slane %v559_v17, 5  ;;  %v1576_v56 = vld [vmem:[%s2112_s28 + $0x18] sm:$0xff] }
  0xac   : > { %v485_v58 = vsel %vm475_vm1, %v468_v57, %v426_v51  ;;  %v432_v12 = vpop.permute.xlu2 %431  ;;  %1643 = vrot.lane.b32.xlu2 %v1576_v56, %s1963_s20 }
  0xad   : > { %v508_v60 = vunpack.c.l.b16 %v485_v58  ;;  %v509_v5 = vunpack.c.h.b16 %v485_v58  ;;  %v556_v1 = vor.u32 %v555_v0, %v552_v63 }
  0xaf   : > { %v524_v2 = vpack.c.b16 %v508_v60, %v508_v60  ;;  %v2120_v18 = vpack.c.b16 %v509_v5, %v509_v5  ;;  %v557_v28 = vrot.slane %v556_v1, 4 }
  0xb1   : > { %v418_v7 = vpop.permute.xlu1 %417  ;;  %v592_v8 = vshrl.u32 %v524_v2, 16  ;;  %v595_v9 = vshll.u32 %v524_v2, 16  ;;  %v601_v46 = vshll.u32 %v2120_v18, 16  ;;  %v562_v40 = vsel %vm2139_vm5, %v557_v28, %v561_v29 }
  0xb2   : > { %v477_v10 = vsel %vm475_vm1, %v460_v3, %v418_v7  ;;  %v408_v30 = vpop.permute.xlu0 %407  ;;  %v650_v63 = vunpack.c.l.b16 %v562_v40 }
  0xb3   : > { %v500_v13 = vunpack.c.l.b16 %v477_v10  ;;  %v501_v6 = vunpack.c.h.b16 %v477_v10  ;;  %v474_v16 = vsel %vm458_vm2, %v457_v47, %v408_v30  ;;  %v594_v21 = vrot.slane %v592_v8, 4 }
  0xb4   : > { %v2123_v20 = vsel %vm475_vm1, %v474_v16, %v432_v12  ;;  %v597_v22 = vrot.slane %v595_v9, 5 }
  0xb5   : > { %v516_v19 = vpack.c.b16 %v500_v13, %v500_v13  ;;  %v517_v23 = vpack.c.b16 %v501_v6, %v501_v6  ;;  %v514_v26 = vunpack.c.l.b16 %v2123_v20  ;;  %v515_v61 = vunpack.c.h.b16 %v2123_v20 }
  0xb6   : > { %v598_v35 = vor.u32 %v597_v22, %v594_v21 }
  0xb7   : > { %v536_v31 = vshrl.u32 %v516_v19, 16  ;;  %v539_v33 = vshll.u32 %v516_v19, 16  ;;  %v545_v38 = vshll.u32 %v517_v23, 16  ;;  %v530_v39 = vpack.c.b16 %v514_v26, %v514_v26 }
  0xb8   : > { %v2153_v60 = vrot.slane %v598_v35, 4  ;;  %v531_v16 = vpack.c.b16 %v515_v61, %v515_v61 }
  0xb9   : > { %v538_v42 = vrot.slane %v536_v31, 4  ;;  %v541_v44 = vrot.slane %v539_v33, 5  ;;  %v424_v45 = vpop.permute.xlu1 %423  ;;  %v547_v53 = vrot.slane %v545_v38, 5  ;;  %v634_v11 = vshrl.u32 %v530_v39, 16 }
  0xba   : > { %v422_v48 = vpop.permute.xlu0 %421  ;;  %v483_v50 = vsel %vm475_vm1, %v466_v34, %v424_v45  ;;  %v637_v54 = vshll.u32 %v530_v39, 16 }
  0xbb   : > { %v542_v49 = vor.u32 %v541_v44, %v538_v42  ;;  %v481_v51 = vsel %vm475_vm1, %v464_v25, %v422_v48  ;;  %v506_v55 = vunpack.c.l.b16 %v483_v50  ;;  %v507_v52 = vunpack.c.h.b16 %v483_v50 }
  0xbc   : > { %v504_v58 = vunpack.c.l.b16 %v481_v51  ;;  %v505_v59 = vunpack.c.h.b16 %v481_v51  ;;  %v636_v4 = vrot.slane %v634_v11, 4  ;;  %v639_v9 = vrot.slane %v637_v54, 5 }
  0xbd   : > { %v543_v57 = vrot.slane %v542_v49, 4  ;;  %v522_v62 = vpack.c.b16 %v506_v55, %v506_v55  ;;  %v523_v0 = vpack.c.b16 %v507_v52, %v507_v52  ;;  %v643_v42 = vshll.u32 %v531_v16, 16 }
  0xbe   : > { %v520_v2 = vpack.c.b16 %v504_v58, %v504_v58  ;;  %v521_v36 = vpack.c.b16 %v505_v59, %v505_v59  ;;  %v640_v27 = vor.u32 %v639_v9, %v636_v4  ;;  %v603_v59 = vrot.slane %v601_v46, 5 }
  0xbf   : > { %v548_v3 = vsel %vm2139_vm5, %v543_v57, %v547_v53  ;;  %v578_v5 = vshrl.u32 %v522_v62, 16  ;;  %v581_v7 = vshll.u32 %v522_v62, 16  ;;  %v587_v10 = vshll.u32 %v523_v0, 16 }
  0xc0   : > { %v649_v8 = vunpack.c.l.b16 %v548_v3  ;;  %v564_v30 = vshrl.u32 %v520_v2, 16  ;;  %v567_v12 = vshll.u32 %v520_v2, 16  ;;  %v573_v20 = vshll.u32 %v521_v36, 16 }
  0xc1   : > { %v430_v47 = vpop.permute.xlu1 %429  ;;  %v580_v1 = vrot.slane %v578_v5, 4  ;;  %v583_v13 = vrot.slane %v581_v7, 5  ;;  %v589_v33 = vrot.slane %v587_v10, 5  ;;  %v641_v35 = vrot.slane %v640_v27, 4 }
  0xc2   : > { %v489_v14 = vsel %vm475_vm1, %v472_v37, %v430_v47  ;;  %v428_v15 = vpop.permute.xlu0 %427  ;;  %v657_v6 = vpack.c.b16 %v650_v63, %v649_v8  ;;  %v566_v17 = vrot.slane %v564_v30, 4  ;;  %v569_v19 = vrot.slane %v567_v12, 5  ;;  %v1575_v12 = vld [vmem:[%s2112_s28 + $0x10] sm:$0xff] }
  0xc3   : > { %v584_v21 = vor.u32 %v583_v13, %v580_v1  ;;  %v512_v22 = vunpack.c.l.b16 %v489_v14  ;;  %v513_v23 = vunpack.c.h.b16 %v489_v14  ;;  %v487_v26 = vsel %vm475_vm1, %v470_v32, %v428_v15  ;;  %1641 = vrot.lane.b32.xlu1 %v1575_v12, %s1963_s20 }
  0xc4   : > { %1897 = vmatmul.msk.bf16.vlgmr.msra.gmra.mxu0 %vm667_vm6, %v657_v6  ;;  %v570_v24 = vor.u32 %v569_v19, %v566_v17  ;;  %v510_v43 = vunpack.c.l.b16 %v487_v26  ;;  %v511_v28 = vunpack.c.h.b16 %v487_v26  ;;  %v575_v39 = vrot.slane %v573_v20, 5 }
  0xc5   : > { %v585_v31 = vrot.slane %v584_v21, 4  ;;  %v528_v34 = vpack.c.b16 %v512_v22, %v512_v22  ;;  %v529_v37 = vpack.c.b16 %v513_v23, %v513_v23  ;;  %v645_v52 = vrot.slane %v643_v42, 5 }
  0xc6   : > { %v571_v38 = vrot.slane %v570_v24, 4  ;;  %v526_v25 = vpack.c.b16 %v510_v43, %v510_v43  ;;  %v527_v29 = vpack.c.b16 %v511_v28, %v511_v28  ;;  %v604_v4 = vsel %vm2139_vm5, %v2153_v60, %v603_v59 }
  0xc7   : > { %v620_v44 = vshrl.u32 %v528_v34, 16  ;;  %v623_v45 = vshll.u32 %v528_v34, 16  ;;  %v590_v32 = vsel %vm2139_vm5, %v585_v31, %v589_v33  ;;  %v629_v53 = vshll.u32 %v529_v37, 16 }
  0xc8   : > { %v606_v48 = vshrl.u32 %v526_v25, 16  ;;  %v609_v49 = vshll.u32 %v526_v25, 16  ;;  %v576_v50 = vsel %vm2139_vm5, %v571_v38, %v575_v39  ;;  %v615_v56 = vshll.u32 %v527_v29, 16 }
  0xc9   : > { %v622_v51 = vrot.slane %v620_v44, 4  ;;  %v625_v40 = vrot.slane %v623_v45, 5  ;;  %v651_v11 = vunpack.c.l.b16 %v576_v50  ;;  %v652_v57 = vunpack.c.l.b16 %v590_v32 }
  0xca   : > { %v608_v54 = vrot.slane %v606_v48, 4  ;;  %v611_v55 = vrot.slane %v609_v49, 5  ;;  %v631_v0 = vrot.slane %v629_v53, 5  ;;  %v646_v2 = vsel %vm2139_vm5, %v641_v35, %v645_v52 }
  0xcb   : > { %v626_v58 = vor.u32 %v625_v40, %v622_v51  ;;  %v658_v62 = vpack.c.b16 %v652_v57, %v651_v11  ;;  %v617_v3 = vrot.slane %v615_v56, 5  ;;  %v656_v7 = vunpack.c.l.b16 %v646_v2 }
  0xcc   : > { %v612_v61 = vor.u32 %v611_v55, %v608_v54  ;;  %v653_v8 = vunpack.c.l.b16 %v604_v4 }
  0xcd   : > { %v627_v63 = vrot.slane %v626_v58, 4  ;;  %1898 = vmatmul.msk.bf16.vlgmr.msra.gmra.mxu1 %vm667_vm6, %v658_v62 }
  0xce   : > { %v613_v36 = vrot.slane %v612_v61, 4 }
  0xcf   : > { %v632_v18 = vsel %vm2139_vm5, %v627_v63, %v631_v0 }
  0xd0   : > { %v618_v46 = vsel %vm2139_vm5, %v613_v36, %v617_v3  ;;  %v655_v5 = vunpack.c.l.b16 %v632_v18 }
  0xd1   : > { %v654_v9 = vunpack.c.l.b16 %v618_v46 }
  0xd2   : > { %v660_v10 = vpack.c.b16 %v656_v7, %v655_v5 }
  0xd3   : > { %v659_v30 = vpack.c.b16 %v654_v9, %v653_v8 }
  0xd4   : > { %1900 = vmatmul.msk.bf16.vlgmr.msra.gmra.mxu3 %vm667_vm6, %v660_v10 }
  0xd5   : > { %1899 = vmatmul.msk.bf16.vlgmr.msra.gmra.mxu2 %vm667_vm6, %v659_v30 }
  0xd8   : > { %v2294_v5 = vpop.permute.xlu2 %1637 }
 0x141   : > { %v2182_v60 = vpop.f32.mrf.mxu0 }
 0x142   : > { %v829_v47 = vperm.slane %v2182_v60, 0  ;;  %v718_v41 = vrot.slane %v2182_v60, 2  ;;  %v719_v13 = vrot.slane %v2182_v60, 3  ;;  %v721_v14 = vrot.slane %v2182_v60, 5 }
 0x143   : > { %v722_v19 = vrot.slane %v2182_v60, 6  ;;  %v717_v21 = vrot.slane %v2182_v60, 1  ;;  %v720_v43 = vrot.slane %v2182_v60, 4  ;;  %v723_v38 = vrot.slane %v2182_v60, 7 }
 0x144   : > { %893 = vrot.lane.b32.xlu0 %v829_v47, %s1966_s29  ;;  %v831_v1 = vperm.slane %v718_v41, 0  ;;  %v832_v15 = vperm.slane %v719_v13, 0  ;;  %v834_v16 = vperm.slane %v721_v14, 0 }
 0x145   : > { %v835_v22 = vperm.slane %v722_v19, 0  ;;  %v830_v26 = vperm.slane %v717_v21, 0  ;;  %v833_v33 = vperm.slane %v720_v43, 0  ;;  %v836_v29 = vperm.slane %v723_v38, 0 }
 0x146   : > { %897 = vrot.lane.b32.xlu2 %v831_v1, %s1966_s29  ;;  %v2311_v1 = vpop.permute.xlu2 %1643 }
 0x149   : > { %v2252_v50 = vpop.f32.mrf.mxu0 }
 0x14a   : > { %v2194_v6 = vpop.f32.mrf.mxu1  ;;  %v837_v53 = vperm.slane %v2252_v50, 0 }
 0x14b   : > { %v845_v17 = vperm.slane %v2194_v6, 0  ;;  %v731_v20 = vrot.slane %v2194_v6, 1  ;;  %v732_v27 = vrot.slane %v2194_v6, 2  ;;  %v734_v24 = vrot.slane %v2194_v6, 4 }
 0x14c   : > { %899 = vrot.lane.b32.xlu0 %v832_v15, %s1966_s29  ;;  %v735_v34 = vrot.slane %v2194_v6, 5  ;;  %v737_v37 = vrot.slane %v2194_v6, 7  ;;  %v733_v45 = vrot.slane %v2194_v6, 3  ;;  %v736_v51 = vrot.slane %v2194_v6, 6 }
 0x14d   : > { %925 = vrot.lane.b32.xlu1 %v845_v17, %s1966_s29  ;;  %v846_v23 = vperm.slane %v731_v20, 0  ;;  %v847_v28 = vperm.slane %v732_v27, 0  ;;  %v849_v31 = vperm.slane %v734_v24, 0 }
 0x14e   : > { %903 = vrot.lane.b32.xlu2 %v834_v16, %s1966_s29  ;;  %v850_v39 = vperm.slane %v735_v34, 0  ;;  %v852_v25 = vperm.slane %v737_v37, 0  ;;  %v848_v48 = vperm.slane %v733_v45, 0  ;;  %v851_v11 = vperm.slane %v736_v51, 0 }
 0x14f   : > { %v726_v16 = vrot.slane %v2252_v50, 3 }
 0x152   : > { %v2249_v49 = vpop.f32.mrf.mxu1 }
 0x153   : > { %v853_v40 = vperm.slane %v2249_v49, 0 }
 0x154   : > { %905 = vrot.lane.b32.xlu0 %v835_v22, %s1966_s29 }
 0x155   : > { %895 = vrot.lane.b32.xlu1 %v830_v26, %s1966_s29 }
 0x156   : > { %927 = vrot.lane.b32.xlu2 %v846_v23, %s1966_s29  ;;  %v840_v23 = vperm.slane %v726_v16, 0 }
 0x157   : > { %v2237_v42 = vpop.f32.mrf.mxu3 }
 0x158   : > { %v2240_v44 = vpop.f32.mrf.mxu2  ;;  %v877_v32 = vperm.slane %v2237_v42, 0  ;;  %v760_v3 = vrot.slane %v2237_v42, 2  ;;  %v759_v4 = vrot.slane %v2237_v42, 1  ;;  %v761_v8 = vrot.slane %v2237_v42, 3 }
 0x159   : > { %v861_v35 = vperm.slane %v2240_v44, 0  ;;  %v745_v54 = vrot.slane %v2240_v44, 1  ;;  %v747_v55 = vrot.slane %v2240_v44, 3  ;;  %v746_v56 = vrot.slane %v2240_v44, 2 }
 0x15a   : > { %v748_v59 = vrot.slane %v2240_v44, 4  ;;  %v750_v61 = vrot.slane %v2240_v44, 6  ;;  %v749_v62 = vrot.slane %v2240_v44, 5  ;;  %v751_v36 = vrot.slane %v2240_v44, 7 }
 0x15b   : > { %v862_v57 = vperm.slane %v745_v54, 0  ;;  %v864_v52 = vperm.slane %v747_v55, 0  ;;  %v863_v58 = vperm.slane %v746_v56, 0  ;;  %v879_v46 = vperm.slane %v760_v3, 0 }
 0x15c   : > { %929 = vrot.lane.b32.xlu0 %v847_v28, %s1966_s29  ;;  %v865_v63 = vperm.slane %v748_v59, 0  ;;  %v867_v0 = vperm.slane %v750_v61, 0  ;;  %v866_v2 = vperm.slane %v749_v62, 0  ;;  %v868_v18 = vperm.slane %v751_v36, 0 }
 0x15d   : > { %901 = vrot.lane.b32.xlu1 %v833_v33, %s1966_s29  ;;  %v878_v7 = vperm.slane %v759_v4, 0  ;;  %v763_v9 = vrot.slane %v2237_v42, 5  ;;  %v762_v10 = vrot.slane %v2237_v42, 4  ;;  %v880_v30 = vperm.slane %v761_v8, 0 }
 0x15e   : > { %933 = vrot.lane.b32.xlu2 %v849_v31, %s1966_s29  ;;  %v3424_v15 = vrot.slane %v2237_v42, 6  ;;  %v765_v17 = vrot.slane %v2237_v42, 7  ;;  %v3415_v28 = vrot.slane %v2252_v50, 1  ;;  %v3423_v33 = vrot.slane %v2252_v50, 6 }
 0x15f   : > { %v882_v12 = vperm.slane %v763_v9, 0  ;;  %v881_v47 = vperm.slane %v762_v10, 0 }
 0x160   : > { %v883_v22 = vperm.slane %v3424_v15, 0  ;;  %v884_v26 = vperm.slane %v765_v17, 0 }
 0x164   : > { %935 = vrot.lane.b32.xlu0 %v850_v39, %s1966_s29  ;;  %v725_v39 = vrot.slane %v2252_v50, 2 }
 0x165   : > { %907 = vrot.lane.b32.xlu1 %v836_v29, %s1966_s29  ;;  %v838_v29 = vperm.slane %v3415_v28, 0 }
 0x166   : > { %939 = vrot.lane.b32.xlu2 %v852_v25, %s1966_s29 }
 0x16c   : > { %989 = vrot.lane.b32.xlu0 %v877_v32, %s1966_s29  ;;  %v843_v32 = vperm.slane %v3423_v33, 0 }
 0x16d   : > { %931 = vrot.lane.b32.xlu1 %v848_v48, %s1966_s29  ;;  %v3407_v48 = vrot.slane %v2252_v50, 4 }
 0x16e   : > { %957 = vrot.lane.b32.xlu2 %v861_v35, %s1966_s29  ;;  %v839_v35 = vperm.slane %v725_v39, 0 }
 0x174   : > { %941 = vrot.lane.b32.xlu0 %v853_v40, %s1966_s29  ;;  %v3412_v40 = vrot.slane %v2249_v49, 2 }
 0x175   : > { %937 = vrot.lane.b32.xlu1 %v851_v11, %s1966_s29 }
 0x176   : > { %909 = vrot.lane.b32.xlu2 %v837_v53, %s1966_s29  ;;  %v3425_v53 = vrot.slane %v2252_v50, 5 }
 0x17c   : > { %959 = vrot.lane.b32.xlu0 %v862_v57, %s1966_s29  ;;  %v841_v57 = vperm.slane %v3407_v48, 0 }
 0x17d   : > { %961 = vrot.lane.b32.xlu1 %v863_v58, %s1966_s29  ;;  %v2358_v58 = vpop.permute.xlu0 %1639 }
 0x17e   : > { %963 = vrot.lane.b32.xlu2 %v864_v52, %s1966_s29  ;;  %v855_v52 = vperm.slane %v3412_v40, 0 }
 0x184   : > { %965 = vrot.lane.b32.xlu0 %v865_v63, %s1966_s29  ;;  %v842_v63 = vperm.slane %v3425_v53, 0 }
 0x185   : > { %967 = vrot.lane.b32.xlu1 %v866_v2, %s1966_s29  ;;  %v3406_v2 = vrot.slane %v2249_v49, 5 }
 0x186   : > { %969 = vrot.lane.b32.xlu2 %v867_v0, %s1966_s29 }
 0x18c   : > { %971 = vrot.lane.b32.xlu0 %v868_v18, %s1966_s29  ;;  %v3418_v18 = vrot.slane %v2249_v49, 1 }
 0x18d   : > { %991 = vrot.lane.b32.xlu1 %v878_v7, %s1966_s29  ;;  %v858_v7 = vperm.slane %v3406_v2, 0 }
 0x18e   : > { %993 = vrot.lane.b32.xlu2 %v879_v46, %s1966_s29 }
 0x194   : > { %995 = vrot.lane.b32.xlu0 %v880_v30, %s1966_s29  ;;  %v854_v30 = vperm.slane %v3418_v18, 0 }
 0x195   : > { %997 = vrot.lane.b32.xlu1 %v881_v47, %s1966_s29  ;;  %v3399_v47 = vrot.slane %v2249_v49, 3 }
 0x196   : > { %999 = vrot.lane.b32.xlu2 %v882_v12, %s1966_s29 }
 0x19c   : > { %1001 = vrot.lane.b32.xlu0 %v883_v22, %s1966_s29  ;;  %v2379_v22 = vpop.permute.xlu1 %1641 }
 0x19d   : > { %1003 = vrot.lane.b32.xlu1 %v884_v26, %s1966_s29 }
 0x19e   : > { %915 = vrot.lane.b32.xlu2 %v840_v23, %s1966_s29 }
 0x1a0   : > { %v898_v31 = vpop.permute.xlu2 %897 }
 0x1a1   : > { %v2332_v25 = vsel %vm1085_vm7, %v718_v41, %v898_v31  ;;  %v2388_v31 = vpop.f32.mrf.mxu3 }
 0x1a2   : > { %1346 = vst [vmem:[#allocation1 + $0x2] ss:$4 sm:$0xff] %v2332_v25  ;;  %v3422_v18 = vrot.slane %v2388_v31, 5 }
 0x1a4   : > { %911 = vrot.lane.b32.xlu0 %v838_v29, %s1966_s29  ;;  %v3408_v29 = vrot.slane %v2249_v49, 4 }
 0x1a5   : > { %913 = vrot.lane.b32.xlu1 %v839_v35, %s1966_s29  ;;  %v885_v35 = vperm.slane %v2388_v31, 0 }
 0x1a6   : > { %921 = vrot.lane.b32.xlu2 %v843_v32, %s1966_s29  ;;  %v856_v32 = vperm.slane %v3399_v47, 0 }
 0x1a8   : > { %v904_v41 = vpop.permute.xlu2 %903 }
 0x1a9   : > { %v2350_v11 = vsel %vm1085_vm7, %v721_v14, %v904_v41  ;;  %v3402_v14 = vrot.slane %v2252_v50, 7  ;;  %v2395_v41 = vpop.f32.mrf.mxu2 }
 0x1aa   : > { %1352 = vst [vmem:[#allocation1 + $0x21] ss:$4 sm:$0xff] %v2350_v11  ;;  %v3404_v47 = vrot.slane %v2395_v41, 2 }
 0x1ab   : > { %v844_v46 = vperm.slane %v3402_v14, 0 }
 0x1ac   : > { %917 = vrot.lane.b32.xlu0 %v841_v57, %s1966_s29  ;;  %v857_v57 = vperm.slane %v3408_v29, 0 }
 0x1ad   : > { %919 = vrot.lane.b32.xlu1 %v842_v63, %s1966_s29  ;;  %v3400_v63 = vrot.slane %v2249_v49, 6 }
 0x1ae   : > { %945 = vrot.lane.b32.xlu2 %v855_v52, %s1966_s29 }
 0x1b0   : > { %v2365_v0 = vpop.permute.xlu2 %927 }
 0x1b4   : > { %923 = vrot.lane.b32.xlu0 %v844_v46, %s1966_s29 }
 0x1b5   : > { %943 = vrot.lane.b32.xlu1 %v854_v30, %s1966_s29  ;;  %v3401_v30 = vrot.slane %v2395_v41, 1 }
 0x1b6   : > { %951 = vrot.lane.b32.xlu2 %v858_v7, %s1966_s29  ;;  %v894_v12 = vpop.permute.xlu0 %893 }
 0x1b7   : > { %v2383_v23 = vsel %vm1085_vm7, %v2182_v60, %v894_v12 }
 0x1b8   : > { %v2385_v26 = vpop.permute.xlu2 %933  ;;  %1342 = vst [vmem:[#allocation1] ss:$4 sm:$0xff] %v2383_v23 }
 0x1b9   : > { %v2579_v33 = vsel %vm1085_vm7, %v734_v24, %v2385_v26 }
 0x1bc   : > { %947 = vrot.lane.b32.xlu0 %v856_v32, %s1966_s29  ;;  %v3403_v32 = vrot.slane %v2249_v49, 7 }
 0x1bd   : > { %949 = vrot.lane.b32.xlu1 %v857_v57, %s1966_s29  ;;  %v870_v57 = vperm.slane %v3401_v30, 0  ;;  %v3405_v30 = vrot.slane %v2395_v41, 4 }
 0x1be   : > { %1005 = vrot.lane.b32.xlu2 %v885_v35, %s1966_s29  ;;  %v900_v52 = vpop.permute.xlu0 %899  ;;  %v859_v35 = vperm.slane %v3400_v63, 0 }
 0x1bf   : > { %v2405_v46 = vsel %vm1085_vm7, %v719_v13, %v900_v52  ;;  %v2411_v12 = vpop.permute.xlu1 %925  ;;  %v860_v13 = vperm.slane %v3403_v32, 0 }
 0x1c0   : > { %v2407_v7 = vpop.permute.xlu2 %939  ;;  %1348 = vst [vmem:[#allocation1 + $0x3] ss:$4 sm:$0xff] %v2405_v46 }
 0x1c4   : > { %953 = vrot.lane.b32.xlu0 %v859_v35, %s1966_s29 }
 0x1c5   : > { %955 = vrot.lane.b32.xlu1 %v860_v13, %s1966_s29 }
 0x1c6   : > { %975 = vrot.lane.b32.xlu2 %v870_v57, %s1966_s29  ;;  %v906_v52 = vpop.permute.xlu0 %905  ;;  %v871_v57 = vperm.slane %v3404_v47, 0  ;;  %v3409_v47 = vrot.slane %v2395_v41, 5 }
 0x1c7   : > { %v2427_v63 = vsel %vm1085_vm7, %v722_v19, %v906_v52  ;;  %v896_v14 = vpop.permute.xlu1 %895  ;;  %v873_v19 = vperm.slane %v3405_v30, 0  ;;  %v869_v52 = vperm.slane %v2395_v41, 0 }
 0x1c8   : > { %v2429_v35 = vpop.permute.xlu2 %957  ;;  %1354 = vst [vmem:[#allocation1 + $0x22] ss:$4 sm:$0xff] %v2427_v63  ;;  %v2438_v13 = vsel %vm1085_vm7, %v717_v21, %v896_v14  ;;  %v3410_v14 = vrot.slane %v2395_v41, 7  ;;  %v874_v30 = vperm.slane %v3409_v47, 0 }
 0x1c9   : > { %1344 = vst [vmem:[#allocation1 + $0x1] ss:$4 sm:$0xff] %v2438_v13 }
 0x1ca   : > { %v876_v48 = vperm.slane %v3410_v14, 0  ;;  %v3416_v14 = vrot.slane %v2395_v41, 6 }
 0x1cc   : > { %977 = vrot.lane.b32.xlu0 %v871_v57, %s1966_s29 }
 0x1cd   : > { %973 = vrot.lane.b32.xlu1 %v869_v52, %s1966_s29 }
 0x1ce   : > { %981 = vrot.lane.b32.xlu2 %v873_v19, %s1966_s29  ;;  %v2446_v32 = vpop.permute.xlu0 %929  ;;  %v3411_v19 = vrot.slane %v2395_v41, 3 }
 0x1cf   : > { %v902_v57 = vpop.permute.xlu1 %901 }
 0x1d0   : > { %v2457_v21 = vpop.permute.xlu2 %909  ;;  %v1357_v2 = vld.sshfl [vmem:[#allocation1] sm:$0xff pattern:$0x73625140]  ;;  %v1090_v52 = vsel %vm1085_vm7, %v720_v43, %v902_v57  ;;  %v872_v29 = vperm.slane %v3411_v19, 0  ;;  %v3413_v43 = vrot.slane %v2388_v31, 1 }
 0x1d1   : > { %1541 = vst.msk [vmem:[%s2455_s5] sm:$0xff] %vm433_vm0, %v1357_v2 }
 0x1d2   : > { %1350 = vst [vmem:[#allocation1 + $0x20] ss:$4 sm:$0xff] %v1090_v52  ;;  %v886_v19 = vperm.slane %v3413_v43, 0  ;;  %v3417_v43 = vrot.slane %v2388_v31, 4 }
 0x1d3   : > { %1734 = vst.msk [vmem:[%s2455_s5] sm:$0xff] %vm1733_vm8, %v2294_v5 }
 0x1d4   : > { %983 = vrot.lane.b32.xlu0 %v874_v30, %s1966_s29  ;;  %v3414_v30 = vrot.slane %v2388_v31, 3 }
 0x1d5   : > { %979 = vrot.lane.b32.xlu1 %v872_v29, %s1966_s29  ;;  %v875_v29 = vperm.slane %v3416_v14, 0 }
 0x1d6   : > { %987 = vrot.lane.b32.xlu2 %v876_v48, %s1966_s29  ;;  %v2477_v47 = vpop.permute.xlu0 %935  ;;  %v888_v48 = vperm.slane %v3414_v30, 0  ;;  %v889_v30 = vperm.slane %v3417_v43, 0  ;;  %v3421_v43 = vrot.slane %v2388_v31, 7 }
 0x1d7   : > { %v908_v57 = vpop.permute.xlu1 %907 }
 0x1d8   : > { %v2481_v2 = vpop.permute.xlu2 %963  ;;  %v1093_v5 = vsel %vm1085_vm7, %v723_v38, %v908_v57  ;;  %v3419_v38 = vrot.slane %v2388_v31, 6  ;;  %v3420_v57 = vrot.slane %v2388_v31, 2 }
 0x1d9   : > { %1356 = vst [vmem:[#allocation1 + $0x23] ss:$4 sm:$0xff] %v1093_v5 }
 0x1dc   : > { %1007 = vrot.lane.b32.xlu0 %v886_v19, %s1966_s29 }
 0x1dd   : > { %985 = vrot.lane.b32.xlu1 %v875_v29, %s1966_s29  ;;  %v887_v29 = vperm.slane %v3420_v57, 0 }
 0x1de   : > { %1011 = vrot.lane.b32.xlu2 %v888_v48, %s1966_s29  ;;  %v2496_v40 = vpop.permute.xlu0 %989  ;;  %v891_v48 = vperm.slane %v3419_v38, 0  ;;  %v892_v38 = vperm.slane %v3421_v43, 0 }
 0x1df   : > { %v932_v19 = vpop.permute.xlu1 %931 }
 0x1e0   : > { %v2500_v60 = vpop.permute.xlu2 %969  ;;  %v1358_v28 = vld.sshfl [vmem:[#allocation1 + $0x20] sm:$0xff pattern:$0x73625140] }
 0x1e1   : > { %1542 = vst.msk [vmem:[%s2455_s5 + $0x8] sm:$0xff] %vm433_vm0, %v1358_v28 }
 0x1e2   : > { %1735 = vst.msk [vmem:[%s2455_s5 + $0x8] sm:$0xff] %vm1733_vm8, %v2358_v58  ;;  %v890_v58 = vperm.slane %v3422_v18, 0 }
 0x1e4   : > { %1013 = vrot.lane.b32.xlu0 %v889_v30, %s1966_s29 }
 0x1e5   : > { %1009 = vrot.lane.b32.xlu1 %v887_v29, %s1966_s29 }
 0x1e6   : > { %1017 = vrot.lane.b32.xlu2 %v891_v48, %s1966_s29  ;;  %v2517_v14 = vpop.permute.xlu0 %941  ;;  %v2532_v48 = vsel %vm1085_vm7, %v2194_v6, %v2411_v12 }
 0x1e7   : > { %v938_v30 = vpop.permute.xlu1 %937 }
 0x1e8   : > { %v2521_v28 = vpop.permute.xlu2 %993 }
 0x1ec   : > { %1019 = vrot.lane.b32.xlu0 %v892_v38, %s1966_s29 }
 0x1ed   : > { %1015 = vrot.lane.b32.xlu1 %v890_v58, %s1966_s29 }
 0x1ee   : > { %1246 = vrot.lane.b32.xlu2 %v2532_v48, %s1967_s6  ;;  %v2536_v29 = vpop.permute.xlu0 %959 }
 0x1ef   : > { %v962_v43 = vpop.permute.xlu1 %961 }
 0x1f0   : > { %v2539_v57 = vpop.permute.xlu2 %999  ;;  %v2639_v6 = vsel %vm1085_vm7, %v746_v56, %v962_v43  ;;  %v2657_v56 = vsel %vm1085_vm7, %v2252_v50, %v2457_v21  ;;  %v2669_v43 = vsel %vm1085_vm7, %v2249_v49, %v2517_v14  ;;  %v2696_v14 = vsel %vm1085_vm7, %v745_v54, %v2536_v29 }
 0x1f4   : > { %1218 = vrot.lane.b32.xlu0 %v2332_v25, %s1967_s6 }
 0x1f5   : > { %1214 = vrot.lane.b32.xlu1 %v2383_v23, %s1967_s6  ;;  %v2564_v23 = vsel %vm1085_vm7, %v731_v20, %v2365_v0  ;;  %v2586_v20 = vsel %vm1085_vm7, %v733_v45, %v932_v19  ;;  %v2592_v0 = vsel %vm1085_vm7, %v732_v27, %v2446_v32  ;;  %v2606_v45 = vsel %vm1085_vm7, %v737_v37, %v2407_v7 }
 0x1f6   : > { %1216 = vrot.lane.b32.xlu2 %v2438_v13, %s1967_s6  ;;  %v2545_v38 = vpop.permute.xlu0 %965  ;;  %v2613_v27 = vsel %vm1085_vm7, %v736_v51, %v938_v30  ;;  %v2619_v32 = vsel %vm1085_vm7, %v735_v34, %v2477_v47  ;;  %v2632_v51 = vsel %vm1085_vm7, %v2240_v44, %v2429_v35  ;;  %v2644_v34 = vsel %vm1085_vm7, %v2237_v42, %v2496_v40 }
 0x1f7   : > { %v968_v18 = vpop.permute.xlu1 %967  ;;  %v2723_v29 = vsel %vm1085_vm7, %v748_v59, %v2545_v38 }
 0x1f8   : > { %v2549_v12 = vpop.permute.xlu2 %915  ;;  %v2664_v40 = vsel %vm1085_vm7, %v749_v62, %v968_v18  ;;  %v2683_v62 = vsel %vm1085_vm7, %v747_v55, %v2481_v2 }
 0x1fc   : > { %1224 = vrot.lane.b32.xlu0 %v2350_v11, %s1967_s6 }
 0x1fd   : > { %1220 = vrot.lane.b32.xlu1 %v2405_v46, %s1967_s6 }
 0x1fe   : > { %1222 = vrot.lane.b32.xlu2 %v1090_v52, %s1967_s6  ;;  %v2554_v58 = vpop.permute.xlu0 %971 }
 0x1ff   : > { %v992_v13 = vpop.permute.xlu1 %991  ;;  %v2750_v38 = vsel %vm1085_vm7, %v751_v36, %v2554_v58 }
 0x200   : > { %v2558_v25 = vpop.permute.xlu2 %921  ;;  %v2690_v18 = vsel %vm1085_vm7, %v759_v4, %v992_v13  ;;  %v2710_v4 = vsel %vm1085_vm7, %v750_v61, %v2500_v60 }
 0x204   : > { %1248 = vrot.lane.b32.xlu0 %v2564_v23, %s1967_s6 }
 0x205   : > { %1226 = vrot.lane.b32.xlu1 %v2427_v63, %s1967_s6 }
 0x206   : > { %1228 = vrot.lane.b32.xlu2 %v1093_v5, %s1967_s6  ;;  %v2569_v11 = vpop.permute.xlu0 %995 }
 0x207   : > { %v998_v52 = vpop.permute.xlu1 %997  ;;  %v2777_v36 = vsel %vm1085_vm7, %v761_v8, %v2569_v11  ;;  %v3447_v8 = vrot.slane %v2252_v50, 5 }
 0x208   : > { %v2573_v46 = vpop.permute.xlu2 %945  ;;  %v2717_v54 = vsel %vm1085_vm7, %v762_v10, %v998_v52  ;;  %v2737_v10 = vsel %vm1085_vm7, %v760_v3, %v2521_v28  ;;  %3446 = vst [vmem:[#allocation6_spill] sm:$0xff] %v2777_v36 }
 0x209   : > { %3442 = vst [vmem:[#allocation2_spill] sm:$0xff] %v2717_v54 }
 0x20a   : > { %3443 = vst [vmem:[#allocation3_spill] sm:$0xff] %v2737_v10 }
 0x20c   : > { %1254 = vrot.lane.b32.xlu0 %v2579_v33, %s1967_s6 }
 0x20d   : > { %1250 = vrot.lane.b32.xlu1 %v2592_v0, %s1967_s6 }
 0x20e   : > { %1252 = vrot.lane.b32.xlu2 %v2586_v20, %s1967_s6  ;;  %v2596_v63 = vpop.permute.xlu0 %1001 }
 0x20f   : > { %v1004_v26 = vpop.permute.xlu1 %1003 }
 0x210   : > { %v2600_v24 = vpop.permute.xlu2 %951  ;;  %v2744_v59 = vsel %vm1085_vm7, %v765_v17, %v1004_v26  ;;  %v2764_v17 = vsel %vm1085_vm7, %v763_v9, %v2539_v57  ;;  %v3448_v26 = vrot.slane %v2237_v42, 6  ;;  %v3451_v42 = vrot.slane %v2249_v49, 1 }
 0x211   : > { %3444 = vst [vmem:[#allocation4_spill] sm:$0xff] %v2744_v59 }
 0x212   : > { %3445 = vst [vmem:[#allocation5_spill] sm:$0xff] %v2764_v17 }
 0x214   : > { %1260 = vrot.lane.b32.xlu0 %v2606_v45, %s1967_s6 }
 0x215   : > { %1256 = vrot.lane.b32.xlu1 %v2619_v32, %s1967_s6 }
 0x216   : > { %1258 = vrot.lane.b32.xlu2 %v2613_v27, %s1967_s6  ;;  %v2623_v5 = vpop.permute.xlu0 %911 }
 0x217   : > { %v914_v7 = vpop.permute.xlu1 %913 }
 0x218   : > { %v2627_v37 = vpop.permute.xlu2 %1005  ;;  %v2771_v44 = vsel %vm1085_vm7, %v725_v39, %v914_v7  ;;  %v1097_v39 = vsel %vm1085_vm7, %v726_v16, %v2549_v12  ;;  %v2801_v7 = vsel %vm1085_vm7, %v3448_v26, %v2596_v63  ;;  %v3452_v26 = vrot.slane %v2252_v50, 1 }
 0x219   : > { %3449 = vst [vmem:[#allocation7_spill] sm:$0xff] %v2801_v7 }
 0x21c   : > { %1278 = vrot.lane.b32.xlu0 %v2632_v51, %s1967_s6 }
 0x21d   : > { %1310 = vrot.lane.b32.xlu1 %v2644_v34, %s1967_s6 }
 0x21e   : > { %1282 = vrot.lane.b32.xlu2 %v2639_v6, %s1967_s6  ;;  %v2648_v47 = vpop.permute.xlu0 %917 }
 0x21f   : > { %v920_v19 = vpop.permute.xlu1 %919 }
 0x220   : > { %v2652_v35 = vpop.permute.xlu2 %975  ;;  %v2795_v11 = vsel %vm1085_vm7, %v3447_v8, %v920_v19  ;;  %v3450_v19 = vrot.slane %v2252_v50, 6 }
 0x222   : > { %v2813_v8 = vsel %vm1085_vm7, %v3450_v19, %v2558_v25 }
 0x224   : > { %1230 = vrot.lane.b32.xlu0 %v2657_v56, %s1967_s6 }
 0x225   : > { %1262 = vrot.lane.b32.xlu1 %v2669_v43, %s1967_s6 }
 0x226   : > { %1288 = vrot.lane.b32.xlu2 %v2664_v40, %s1967_s6  ;;  %v2673_v30 = vpop.permute.xlu0 %923 }
 0x227   : > { %v944_v15 = vpop.permute.xlu1 %943 }
 0x228   : > { %v2677_v21 = vpop.permute.xlu2 %981  ;;  %v2820_v63 = vsel %vm1085_vm7, %v3451_v42, %v944_v15  ;;  %v3453_v15 = vrot.slane %v2249_v49, 2 }
 0x22a   : > { %v2837_v42 = vsel %vm1085_vm7, %v3453_v15, %v2573_v46 }
 0x22c   : > { %1284 = vrot.lane.b32.xlu0 %v2683_v62, %s1967_s6 }
 0x22d   : > { %1280 = vrot.lane.b32.xlu1 %v2696_v14, %s1967_s6 }
 0x22e   : > { %1312 = vrot.lane.b32.xlu2 %v2690_v18, %s1967_s6  ;;  %v2700_v53 = vpop.permute.xlu0 %947 }
 0x22f   : > { %v950_v2 = vpop.permute.xlu1 %949 }
 0x230   : > { %v2704_v55 = vpop.permute.xlu2 %987 }
 0x234   : > { %1290 = vrot.lane.b32.xlu0 %v2710_v4, %s1967_s6 }
 0x235   : > { %1286 = vrot.lane.b32.xlu1 %v2723_v29, %s1967_s6 }
 0x236   : > { %1318 = vrot.lane.b32.xlu2 %v2717_v54, %s1967_s6  ;;  %v2727_v13 = vpop.permute.xlu0 %953 }
 0x237   : > { %v956_v60 = vpop.permute.xlu1 %955 }
 0x238   : > { %v2731_v61 = vpop.permute.xlu2 %1011 }
 0x23c   : > { %1314 = vrot.lane.b32.xlu0 %v2737_v10, %s1967_s6 }
 0x23d   : > { %1292 = vrot.lane.b32.xlu1 %v2750_v38, %s1967_s6 }
 0x23e   : > { %1324 = vrot.lane.b32.xlu2 %v2744_v59, %s1967_s6  ;;  %v2754_v52 = vpop.permute.xlu0 %977 }
 0x23f   : > { %v974_v28 = vpop.permute.xlu1 %973 }
 0x240   : > { %v2758_v3 = vpop.permute.xlu2 %1017 }
 0x244   : > { %1320 = vrot.lane.b32.xlu0 %v2764_v17, %s1967_s6  ;;  %v3455_v17 = vrot.slane %v2252_v50, 4 }
 0x245   : > { %1316 = vrot.lane.b32.xlu1 %v2777_v36, %s1967_s6  ;;  %v3458_v36 = vrot.slane %v2252_v50, 7  ;;  %v2891_v50 = vsel %vm1085_vm7, %v2395_v41, %v974_v28  ;;  %v3461_v28 = vrot.slane %v2395_v41, 1 }
 0x246   : > { %1234 = vrot.lane.b32.xlu2 %v2771_v44, %s1967_s6  ;;  %v2781_v58 = vpop.permute.xlu0 %983  ;;  %v2850_v54 = vsel %vm1085_vm7, %v3455_v17, %v2648_v47  ;;  %v3457_v47 = vrot.slane %v2249_v49, 7 }
 0x247   : > { %v980_v57 = vpop.permute.xlu1 %979  ;;  %v1101_v10 = vsel %vm1085_vm7, %v3458_v36, %v2673_v30  ;;  %v3460_v30 = vrot.slane %v2249_v49, 3 }
 0x248   : > { %v2785_v9 = vpop.permute.xlu2 %1246  ;;  %v2871_v17 = vsel %vm1085_vm7, %v3457_v47, %v956_v60  ;;  %v2885_v60 = vsel %vm1085_vm7, %v2388_v31, %v2627_v37 }
 0x249   : > { %3459 = vst [vmem:[#allocation8_spill] sm:$0xff] %v2885_v60  ;;  %v2897_v36 = vsel %vm1085_vm7, %v3460_v30, %v2700_v53  ;;  %v3462_v53 = vrot.slane %v2395_v41, 3 }
 0x24b   : > { %v2916_v30 = vsel %vm1085_vm7, %v3462_v53, %v980_v57  ;;  %v3465_v53 = vrot.slane %v2395_v41, 6 }
 0x24c   : > { %1236 = vrot.lane.b32.xlu0 %v1097_v39, %s1967_s6 }
 0x24d   : > { %1322 = vrot.lane.b32.xlu1 %v2801_v7, %s1967_s6  ;;  %v1095_v7 = vsel %vm1085_vm7, %v3452_v26, %v2623_v5  ;;  %v3454_v5 = vrot.slane %v2249_v49, 4 }
 0x24e   : > { %1240 = vrot.lane.b32.xlu2 %v2795_v11, %s1967_s6  ;;  %v2805_v59 = vpop.permute.xlu0 %1007 }
 0x24f   : > { %v986_v12 = vpop.permute.xlu1 %985  ;;  %v2844_v26 = vsel %vm1085_vm7, %v3454_v5, %v950_v2  ;;  %v3456_v2 = vrot.slane %v2249_v49, 5 }
 0x250   : > { %v1217_v16 = vpop.permute.xlu2 %1216 }
 0x251   : > { %1360 = vst [vmem:[#allocation1 + $0x1] ss:$4 sm:$0xff] %v1217_v16  ;;  %v2864_v5 = vsel %vm1085_vm7, %v3456_v2, %v2600_v24 }
 0x254   : > { %1242 = vrot.lane.b32.xlu0 %v2813_v8, %s1967_s6 }
 0x255   : > { %1232 = vrot.lane.b32.xlu1 %v1095_v7, %s1967_s6 }
 0x256   : > { %1264 = vrot.lane.b32.xlu2 %v2820_v63, %s1967_s6  ;;  %v2828_v16 = vpop.permute.xlu0 %1013 }
 0x257   : > { %v2831_v19 = vpop.permute.xlu1 %1009 }
 0x258   : > { %v1223_v25 = vpop.permute.xlu2 %1222 }
 0x259   : > { %1363 = vst [vmem:[#allocation1 + $0x20] ss:$4 sm:$0xff] %v1223_v25 }
 0x25c   : > { %1266 = vrot.lane.b32.xlu0 %v2837_v42, %s1967_s6 }
 0x25d   : > { %1238 = vrot.lane.b32.xlu1 %v2850_v54, %s1967_s6 }
 0x25e   : > { %1270 = vrot.lane.b32.xlu2 %v2844_v26, %s1967_s6  ;;  %v2854_v25 = vpop.permute.xlu0 %1019 }
 0x25f   : > { %v2858_v15 = vpop.permute.xlu1 %1015 }
 0x260   : > { %v1229_v46 = vpop.permute.xlu2 %1228 }
 0x261   : > { %1366 = vst [vmem:[#allocation1 + $0x23] ss:$4 sm:$0xff] %v1229_v46 }
 0x264   : > { %1272 = vrot.lane.b32.xlu0 %v2864_v5, %s1967_s6 }
 0x265   : > { %1244 = vrot.lane.b32.xlu1 %v1101_v10, %s1967_s6 }
 0x266   : > { %1276 = vrot.lane.b32.xlu2 %v2871_v17, %s1967_s6  ;;  %v1219_v46 = vpop.permute.xlu0 %1218 }
 0x267   : > { %1361 = vst [vmem:[#allocation1 + $0x2] ss:$4 sm:$0xff] %v1219_v46  ;;  %v1215_v2 = vpop.permute.xlu1 %1214 }
 0x268   : > { %v2880_v24 = vpop.permute.xlu2 %1252  ;;  %1359 = vst [vmem:[#allocation1] ss:$4 sm:$0xff] %v1215_v2  ;;  %v2909_v2 = vsel %vm1085_vm7, %v3461_v28, %v2652_v35 }
 0x26c   : > { %1326 = vrot.lane.b32.xlu0 %v2885_v60, %s1967_s6 }
 0x26d   : > { %1268 = vrot.lane.b32.xlu1 %v2897_v36, %s1967_s6 }
 0x26e   : > { %1294 = vrot.lane.b32.xlu2 %v2891_v50, %s1967_s6  ;;  %v1225_v47 = vpop.permute.xlu0 %1224 }
 0x26f   : > { %1364 = vst [vmem:[#allocation1 + $0x21] ss:$4 sm:$0xff] %v1225_v47  ;;  %v1221_v46 = vpop.permute.xlu1 %1220  ;;  %v3463_v47 = vrot.slane %v2249_v49, 6  ;;  %v3464_v49 = vrot.slane %v2395_v41, 4 }
 0x270   : > { %v2903_v37 = vpop.permute.xlu2 %1258  ;;  %1362 = vst [vmem:[#allocation1 + $0x3] ss:$4 sm:$0xff] %v1221_v46 }
 0x271   : > { %v2922_v46 = vsel %vm1085_vm7, %v3463_v47, %v2727_v13  ;;  %v2937_v13 = vsel %vm1085_vm7, %v3464_v49, %v2677_v21  ;;  %v2944_v47 = vsel %vm1085_vm7, %v3465_v53, %v986_v12  ;;  %v3470_v53 = vrot.slane %v2395_v41, 5 }
 0x274   : > { %1296 = vrot.lane.b32.xlu0 %v2909_v2, %s1967_s6 }
 0x275   : > { %1274 = vrot.lane.b32.xlu1 %v2922_v46, %s1967_s6 }
 0x276   : > { %1300 = vrot.lane.b32.xlu2 %v2916_v30, %s1967_s6  ;;  %v2926_v35 = vpop.permute.xlu0 %1248 }
 0x277   : > { %v1367_v60 = vld.sshfl [vmem:[#allocation1] sm:$0xff pattern:$0x73625140]  ;;  %v1227_v57 = vpop.permute.xlu1 %1226 }
 0x278   : > { %v2930_v28 = vpop.permute.xlu2 %1282  ;;  %1372 = vst [vmem:[#allocation1 + $0x3] ss:$4 sm:$0xff] %v1097_v39 }
 0x279   : > { %1369 = vst [vmem:[#allocation1] ss:$4 sm:$0xff] %v2657_v56  ;;  %v3466_v56 = vrot.slane %v2395_v41, 2 }
 0x27a   : > { %1370 = vst [vmem:[#allocation1 + $0x1] ss:$4 sm:$0xff] %v1095_v7 }
 0x27b   : > { %1371 = vst [vmem:[#allocation1 + $0x2] ss:$4 sm:$0xff] %v2771_v44  ;;  %v2953_v21 = vsel %vm1085_vm7, %v3466_v56, %v2754_v52  ;;  %v3467_v52 = vrot.slane %v2395_v41, 7 }
 0x27c   : > { %1302 = vrot.lane.b32.xlu0 %v2937_v13, %s1967_s6  ;;  %1543 = vst.msk [vmem:[%s2455_s5 + $0x10] sm:$0xff] %vm433_vm0, %v1367_v60 }
 0x27d   : > { %1365 = vst [vmem:[#allocation1 + $0x22] ss:$4 sm:$0xff] %v1227_v57  ;;  %1298 = vrot.lane.b32.xlu1 %v2953_v21, %s1967_s6  ;;  %v2972_v12 = vsel %vm1085_vm7, %v3467_v52, %v2704_v55  ;;  %v3468_v57 = vrot.slane %v2388_v31, 2  ;;  %v2988_v55 = vsel %vm1085_vm7, %v3470_v53, %v2781_v58  ;;  %v3471_v58 = vrot.slane %v2388_v31, 3 }
 0x27e   : > { %1306 = vrot.lane.b32.xlu2 %v2944_v47, %s1967_s6  ;;  %v2957_v39 = vpop.permute.xlu0 %1254  ;;  %1736 = vst.msk [vmem:[%s2455_s5 + $0x10] sm:$0xff] %vm1733_vm8, %v2379_v22 }
 0x27f   : > { %v2966_v44 = vpop.permute.xlu1 %1250  ;;  %v2980_v49 = vsel %vm1085_vm7, %v3468_v57, %v2831_v19  ;;  %v3007_v52 = vsel %vm1085_vm7, %v3471_v58, %v2731_v61 }
 0x280   : > { %v2961_v7 = vpop.permute.xlu2 %1288  ;;  %3469 = vst [vmem:[#allocation9_spill] sm:$0xff] %v2980_v49 }
 0x281   : > { %3472 = vst [vmem:[#allocation10_spill] sm:$0xff] %v3007_v52 }
 0x282   : > { %v1377_v60 = vld.sshfl [vmem:[#allocation1] sm:$0xff pattern:$0x73625140] }
 0x283   : > { %1545 = vst.msk [vmem:[%s2455_s5 + $0x20] sm:$0xff] %vm433_vm0, %v1377_v60 }
 0x284   : > { %1308 = vrot.lane.b32.xlu0 %v2972_v12, %s1967_s6  ;;  %v1368_v22 = vld.sshfl [vmem:[#allocation1 + $0x20] sm:$0xff pattern:$0x73625140] }
 0x285   : > { %1375 = vst [vmem:[#allocation1 + $0x22] ss:$4 sm:$0xff] %v2813_v8  ;;  %1304 = vrot.lane.b32.xlu1 %v2988_v55, %s1967_s6 }
 0x286   : > { %1330 = vrot.lane.b32.xlu2 %v2980_v49, %s1967_s6  ;;  %v2992_v56 = vpop.permute.xlu0 %1260  ;;  %1373 = vst [vmem:[#allocation1 + $0x20] ss:$4 sm:$0xff] %v2850_v54  ;;  %v3473_v54 = vrot.slane %v2388_v31, 5  ;;  %v1585_v49 = vld [vmem:[%s2112_s28 + $0x60] sm:$0xff] }
 0x287   : > { %1374 = vst [vmem:[#allocation1 + $0x21] ss:$4 sm:$0xff] %v2795_v11  ;;  %v3001_v41 = vpop.permute.xlu1 %1256 }
 0x288   : > { %v2998_v19 = vpop.permute.xlu2 %1312  ;;  %1376 = vst [vmem:[#allocation1 + $0x23] ss:$4 sm:$0xff] %v1101_v10  ;;  %v3020_v11 = vsel %vm1085_vm7, %v3473_v54, %v2858_v15  ;;  %v3475_v10 = vrot.slane %v2388_v31, 1 }
 0x289   : > { %1544 = vst.msk [vmem:[%s2455_s5 + $0x18] sm:$0xff] %vm433_vm0, %v1368_v22  ;;  %v3480_v22 = vrot.slane %v2388_v31, 4 }
 0x28a   : > { %1737 = vst.msk [vmem:[%s2455_s5 + $0x18] sm:$0xff] %vm1733_vm8, %v2311_v1  ;;  %v3026_v61 = vsel %vm1085_vm7, %v3475_v10, %v2805_v59  ;;  %v3478_v59 = vrot.slane %v2388_v31, 6  ;;  %v1577_v10 = vld [vmem:[%s2112_s28 + $0x20] sm:$0xff] }
 0x28b   : > { %3474 = vst [vmem:[#allocation11_spill] sm:$0xff] %v3020_v11  ;;  %v3052_v53 = vsel %vm1085_vm7, %v3480_v22, %v2828_v16  ;;  %v3483_v16 = vrot.slane %v2388_v31, 7  ;;  %v1578_v31 = vld [vmem:[%s2112_s28 + $0x28] sm:$0xff] }
 0x28c   : > { %1332 = vrot.lane.b32.xlu0 %v3007_v52, %s1967_s6  ;;  %3476 = vst [vmem:[#allocation12_spill] sm:$0xff] %v3026_v61  ;;  %v3044_v57 = vsel %vm1085_vm7, %v3478_v59, %v2758_v3 }
 0x28d   : > { %1328 = vrot.lane.b32.xlu1 %v3026_v61, %s1967_s6  ;;  %3479 = vst [vmem:[#allocation14_spill] sm:$0xff] %v3044_v57  ;;  %v3068_v59 = vsel %vm1085_vm7, %v3483_v16, %v2854_v25 }
 0x28e   : > { %1336 = vrot.lane.b32.xlu2 %v3020_v11, %s1967_s6  ;;  %v3030_v8 = vpop.permute.xlu0 %1278  ;;  %3481 = vst [vmem:[#allocation15_spill] sm:$0xff] %v3052_v53  ;;  %v1581_v11 = vld [vmem:[%s2112_s28 + $0x40] sm:$0xff] }
 0x28f   : > { %v3036_v15 = vpop.permute.xlu1 %1310  ;;  %v1378_v60 = vld.sshfl [vmem:[#allocation1 + $0x20] sm:$0xff pattern:$0x73625140]  ;;  %3484 = vst [vmem:[#allocation17_spill] sm:$0xff] %v3068_v59 }
 0x290   : > { %v3034_v1 = vpop.permute.xlu2 %1318  ;;  %1546 = vst.msk [vmem:[%s2455_s5 + $0x28] sm:$0xff] %vm433_vm0, %v1378_v60  ;;  %v1579_v60 = vld [vmem:[%s2112_s28 + $0x30] sm:$0xff] }
 0x291   : > { %3477 = vst [vmem:[#allocation13_spill] sm:$0xff] %v3034_v1  ;;  %v1595_v1 = vld [vmem:[%s2112_s28 + $0xb0] sm:$0xff] }
 0x294   : > { %1338 = vrot.lane.b32.xlu0 %v3044_v57, %s1967_s6 }
 0x295   : > { %1334 = vrot.lane.b32.xlu1 %v3052_v53, %s1967_s6  ;;  %v1586_v53 = vld [vmem:[%s2112_s28 + $0x68] sm:$0xff] }
 0x296   : > { %v1231_v58 = vpop.permute.xlu0 %1230  ;;  %1649 = vrot.lane.b32.xlu2 %v1579_v60, %s1963_s20  ;;  %v1580_v60 = vld [vmem:[%s2112_s28 + $0x38] sm:$0xff] }
 0x297   : > { %1379 = vst [vmem:[#allocation1] ss:$4 sm:$0xff] %v1231_v58  ;;  %v3058_v3 = vpop.permute.xlu1 %1262 }
 0x298   : > { %v3056_v54 = vpop.permute.xlu2 %1324 }
 0x299   : > { %3482 = vst [vmem:[#allocation16_spill] sm:$0xff] %v3056_v54  ;;  %v1592_v54 = vld [vmem:[%s2112_s28 + $0x98] sm:$0xff] }
 0x29c   : > { %1645 = vrot.lane.b32.xlu0 %v1577_v10, %s1963_s20  ;;  %v1582_v10 = vld [vmem:[%s2112_s28 + $0x48] sm:$0xff] }
 0x29d   : > { %1340 = vrot.lane.b32.xlu1 %v3068_v59, %s1967_s6 }
 0x29e   : > { %v3070_v22 = vpop.permute.xlu0 %1284  ;;  %1655 = vrot.lane.b32.xlu2 %v1582_v10, %s1963_s20 }
 0x29f   : > { %v3074_v57 = vpop.permute.xlu1 %1280 }
 0x2a0   : > { %v1235_v58 = vpop.permute.xlu2 %1234 }
 0x2a1   : > { %1381 = vst [vmem:[#allocation1 + $0x2] ss:$4 sm:$0xff] %v1235_v58  ;;  %v1583_v58 = vld [vmem:[%s2112_s28 + $0x50] sm:$0xff] }
 0x2a4   : > { %1651 = vrot.lane.b32.xlu0 %v1580_v60, %s1963_s20 }
 0x2a5   : > { %1647 = vrot.lane.b32.xlu1 %v1578_v31, %s1963_s20  ;;  %v1584_v31 = vld [vmem:[%s2112_s28 + $0x58] sm:$0xff] }
 0x2a6   : > { %v3081_v25 = vpop.permute.xlu0 %1290  ;;  %1661 = vrot.lane.b32.xlu2 %v1585_v49, %s1963_s20 }
 0x2a7   : > { %v3084_v59 = vpop.permute.xlu1 %1286 }
 0x2a8   : > { %v1241_v16 = vpop.permute.xlu2 %1240 }
 0x2a9   : > { %1384 = vst [vmem:[#allocation1 + $0x21] ss:$4 sm:$0xff] %v1241_v16 }
 0x2ac   : > { %1657 = vrot.lane.b32.xlu0 %v1583_v58, %s1963_s20  ;;  %v1589_v58 = vld [vmem:[%s2112_s28 + $0x80] sm:$0xff] }
 0x2ad   : > { %1653 = vrot.lane.b32.xlu1 %v1581_v11, %s1963_s20  ;;  %v1587_v11 = vld [vmem:[%s2112_s28 + $0x70] sm:$0xff] }
 0x2ae   : > { %v3089_v10 = vpop.permute.xlu0 %1314 }
 0x2af   : > { %v3092_v60 = vpop.permute.xlu1 %1292 }
 0x2b4   : > { %1663 = vrot.lane.b32.xlu0 %v1586_v53, %s1963_s20 }
 0x2b5   : > { %1659 = vrot.lane.b32.xlu1 %v1584_v31, %s1963_s20  ;;  %v1588_v31 = vld [vmem:[%s2112_s28 + $0x78] sm:$0xff] }
 0x2b6   : > { %v3097_v52 = vpop.permute.xlu0 %1320  ;;  %1667 = vrot.lane.b32.xlu2 %v1588_v31, %s1963_s20 }
 0x2b7   : > { %3485 = vst [vmem:[#allocation18_spill] sm:$0xff] %v3097_v52  ;;  %v3100_v16 = vpop.permute.xlu1 %1316  ;;  %v1590_v52 = vld [vmem:[%s2112_s28 + $0x88] sm:$0xff] }
 0x2b8   : > { %3486 = vst [vmem:[#allocation19_spill] sm:$0xff] %v3100_v16  ;;  %v3117_v16 = vpop.permute.xlu2 %1264 }
 0x2bc   : > { %1669 = vrot.lane.b32.xlu0 %v1589_v58, %s1963_s20 }
 0x2bd   : > { %1665 = vrot.lane.b32.xlu1 %v1587_v11, %s1963_s20  ;;  %v1593_v11 = vld [vmem:[%s2112_s28 + $0xa0] sm:$0xff] }
 0x2be   : > { %v1237_v61 = vpop.permute.xlu0 %1236 }
 0x2bf   : > { %1382 = vst [vmem:[#allocation1 + $0x3] ss:$4 sm:$0xff] %v1237_v61  ;;  %v3108_v53 = vpop.permute.xlu1 %1322  ;;  %v1591_v61 = vld [vmem:[%s2112_s28 + $0x90] sm:$0xff] }
 0x2c0   : > { %1673 = vrot.lane.b32.xlu2 %v1591_v61, %s1963_s20 }
 0x2c4   : > { %1675 = vrot.lane.b32.xlu0 %v1592_v54, %s1963_s20 }
 0x2c5   : > { %1671 = vrot.lane.b32.xlu1 %v1590_v52, %s1963_s20 }
 0x2c6   : > { %v1243_v49 = vpop.permute.xlu0 %1242 }
 0x2c7   : > { %1385 = vst [vmem:[#allocation1 + $0x22] ss:$4 sm:$0xff] %v1243_v49  ;;  %v1233_v58 = vpop.permute.xlu1 %1232  ;;  %v1598_v49 = vld [vmem:[%s2112_s28 + $0xc8] sm:$0xff] }
 0x2c8   : > { %1380 = vst [vmem:[#allocation1 + $0x1] ss:$4 sm:$0xff] %v1233_v58  ;;  %v3129_v58 = vpop.permute.xlu2 %1270 }
 0x2cc   : > { %1681 = vrot.lane.b32.xlu0 %v1595_v1, %s1963_s20  ;;  %v1596_v1 = vld [vmem:[%s2112_s28 + $0xb8] sm:$0xff] }
 0x2cd   : > { %1677 = vrot.lane.b32.xlu1 %v1593_v11, %s1963_s20 }
 0x2ce   : > { %v3123_v54 = vpop.permute.xlu0 %1266 }
 0x2cf   : > { %v1387_v52 = vld.sshfl [vmem:[#allocation1] sm:$0xff pattern:$0x73625140]  ;;  %v1239_v31 = vpop.permute.xlu1 %1238 }
 0x2d0   : > { %1389 = vst [vmem:[#allocation1] ss:$4 sm:$0xff] %v2532_v48 }
 0x2d1   : > { %1390 = vst [vmem:[#allocation1 + $0x1] ss:$4 sm:$0xff] %v2564_v23  ;;  %v1601_v23 = vld [vmem:[%s2112_s28 + $0xe0] sm:$0xff] }
 0x2d2   : > { %1391 = vst [vmem:[#allocation1 + $0x2] ss:$4 sm:$0xff] %v2592_v0  ;;  %v1599_v0 = vld [vmem:[%s2112_s28 + $0xd0] sm:$0xff] }
 0x2d3   : > { %1392 = vst [vmem:[#allocation1 + $0x3] ss:$4 sm:$0xff] %v2586_v20  ;;  %v3145_v20 = vpop.permute.xlu2 %1276 }
 0x2d4   : > { %1687 = vrot.lane.b32.xlu0 %v1598_v49, %s1963_s20  ;;  %1547 = vst.msk [vmem:[%s2455_s5 + $0x30] sm:$0xff] %vm433_vm0, %v1387_v52  ;;  %v1594_v49 = vld [vmem:[%s2112_s28 + $0xa8] sm:$0xff] }
 0x2d5   : > { %1383 = vst [vmem:[#allocation1 + $0x20] ss:$4 sm:$0xff] %v1239_v31  ;;  %1683 = vrot.lane.b32.xlu1 %v1596_v1, %s1963_s20  ;;  %1679 = vrot.lane.b32.xlu2 %v1594_v49, %s1963_s20  ;;  %v1604_v1 = vld [vmem:[%s2112_s28 + $0xf8] sm:$0xff]  ;;  %v3490_v49 = vld [vmem:[#allocation5_spill] sm:$0xff] }
 0x2d6   : > { %v3137_v61 = vpop.permute.xlu0 %1272 }
 0x2d7   : > { %v1245_v48 = vpop.permute.xlu1 %1244 }
 0x2d8   : > { %1386 = vst [vmem:[#allocation1 + $0x23] ss:$4 sm:$0xff] %v1245_v48  ;;  %v1597_v48 = vld [vmem:[%s2112_s28 + $0xc0] sm:$0xff] }
 0x2da   : > { %v1397_v11 = vld.sshfl [vmem:[#allocation1] sm:$0xff pattern:$0x73625140] }
 0x2db   : > { %1399 = vst [vmem:[#allocation1] ss:$4 sm:$0xff] %v2785_v9 }
 0x2dc   : > { %1693 = vrot.lane.b32.xlu0 %v1601_v23, %s1963_s20  ;;  %1400 = vst [vmem:[#allocation1 + $0x1] ss:$4 sm:$0xff] %v2926_v35  ;;  %v1602_v35 = vld [vmem:[%s2112_s28 + $0xe8] sm:$0xff] }
 0x2dd   : > { %1401 = vst [vmem:[#allocation1 + $0x2] ss:$4 sm:$0xff] %v2966_v44  ;;  %1689 = vrot.lane.b32.xlu1 %v1599_v0, %s1963_s20  ;;  %1685 = vrot.lane.b32.xlu2 %v1597_v48, %s1963_s20  ;;  %v3489_v0 = vld [vmem:[#allocation2_spill] sm:$0xff] }
 0x2de   : > { %v3148_v52 = vpop.permute.xlu0 %1326  ;;  %1402 = vst [vmem:[#allocation1 + $0x3] ss:$4 sm:$0xff] %v2880_v24 }
 0x2df   : > { %1549 = vst.msk [vmem:[%s2455_s5 + $0x40] sm:$0xff] %vm433_vm0, %v1397_v11  ;;  %v1388_v9 = vld.sshfl [vmem:[#allocation1 + $0x20] sm:$0xff pattern:$0x73625140]  ;;  %v1269_v31 = vpop.permute.xlu1 %1268 }
 0x2e0   : > { %1393 = vst [vmem:[#allocation1 + $0x20] ss:$4 sm:$0xff] %v2579_v33  ;;  %v3170_v33 = vpop.permute.xlu2 %1294 }
 0x2e1   : > { %1394 = vst [vmem:[#allocation1 + $0x21] ss:$4 sm:$0xff] %v2619_v32 }
 0x2e2   : > { %1395 = vst [vmem:[#allocation1 + $0x22] ss:$4 sm:$0xff] %v2613_v27 }
 0x2e3   : > { %1396 = vst [vmem:[#allocation1 + $0x23] ss:$4 sm:$0xff] %v2606_v45 }
 0x2e4   : > { %1699 = vrot.lane.b32.xlu0 %v1604_v1, %s1963_s20  ;;  %1548 = vst.msk [vmem:[%s2455_s5 + $0x38] sm:$0xff] %vm433_vm0, %v1388_v9  ;;  %v3492_v9 = vld [vmem:[#allocation4_spill] sm:$0xff] }
 0x2e5   : > { %v1407_v44 = vld.sshfl [vmem:[#allocation1] sm:$0xff pattern:$0x73625140]  ;;  %1695 = vrot.lane.b32.xlu1 %v1602_v35, %s1963_s20 }
 0x2e6   : > { %v3165_v24 = vpop.permute.xlu0 %1296  ;;  %1409 = vst [vmem:[#allocation1] ss:$4 sm:$0xff] %v2669_v43 }
 0x2e7   : > { %1410 = vst [vmem:[#allocation1 + $0x1] ss:$4 sm:$0xff] %v2820_v63  ;;  %v1275_v27 = vpop.permute.xlu1 %1274 }
 0x2e8   : > { %1411 = vst [vmem:[#allocation1 + $0x2] ss:$4 sm:$0xff] %v2837_v42  ;;  %v3188_v42 = vpop.permute.xlu2 %1300 }
 0x2e9   : > { %1412 = vst [vmem:[#allocation1 + $0x3] ss:$4 sm:$0xff] %v2897_v36  ;;  %v1600_v36 = vld [vmem:[%s2112_s28 + $0xd8] sm:$0xff] }
 0x2ea   : > { %1551 = vst.msk [vmem:[%s2455_s5 + $0x50] sm:$0xff] %vm433_vm0, %v1407_v44  ;;  %v1398_v45 = vld.sshfl [vmem:[#allocation1 + $0x20] sm:$0xff pattern:$0x73625140]  ;;  %1691 = vrot.lane.b32.xlu2 %v1600_v36, %s1963_s20 }
 0x2eb   : > { %1403 = vst [vmem:[#allocation1 + $0x20] ss:$4 sm:$0xff] %v2957_v39  ;;  %v3499_v36 = vld [vmem:[#allocation9_spill] sm:$0xff] }
 0x2ec   : > { %1404 = vst [vmem:[#allocation1 + $0x21] ss:$4 sm:$0xff] %v3001_v41 }
 0x2ed   : > { %1405 = vst [vmem:[#allocation1 + $0x22] ss:$4 sm:$0xff] %v2903_v37 }
 0x2ee   : > { %v3181_v32 = vpop.permute.xlu0 %1302  ;;  %1406 = vst [vmem:[#allocation1 + $0x23] ss:$4 sm:$0xff] %v2992_v56 }
 0x2ef   : > { %1550 = vst.msk [vmem:[%s2455_s5 + $0x48] sm:$0xff] %vm433_vm0, %v1398_v45  ;;  %v3186_v43 = vpop.permute.xlu1 %1298 }
 0x2f0   : > { %v1417_v63 = vld.sshfl [vmem:[#allocation1] sm:$0xff pattern:$0x73625140]  ;;  %v3207_v41 = vpop.permute.xlu2 %1306 }
 0x2f1   : > { %1420 = vst [vmem:[#allocation1 + $0x1] ss:$4 sm:$0xff] %v3117_v16 }
 0x2f2   : > { %1419 = vst [vmem:[#allocation1] ss:$4 sm:$0xff] %v3058_v3  ;;  %v1603_v3 = vld [vmem:[%s2112_s28 + $0xf0] sm:$0xff] }
 0x2f3   : > { %1553 = vst.msk [vmem:[%s2455_s5 + $0x60] sm:$0xff] %vm433_vm0, %v1417_v63  ;;  %1697 = vrot.lane.b32.xlu2 %v1603_v3, %s1963_s20  ;;  %v3497_v63 = vld [vmem:[#allocation8_spill] sm:$0xff]  ;;  %v3503_v3 = vld [vmem:[#allocation14_spill] sm:$0xff] }
 0x2f4   : > { %1421 = vst [vmem:[#allocation1 + $0x2] ss:$4 sm:$0xff] %v3123_v54 }
 0x2f5   : > { %v1408_v37 = vld.sshfl [vmem:[#allocation1 + $0x20] sm:$0xff pattern:$0x73625140]  ;;  %1422 = vst [vmem:[#allocation1 + $0x3] ss:$4 sm:$0xff] %v1269_v31 }
 0x2f6   : > { %v3197_v39 = vpop.permute.xlu0 %1308  ;;  %1413 = vst [vmem:[#allocation1 + $0x20] ss:$4 sm:$0xff] %v2844_v26 }
 0x2f7   : > { %1414 = vst [vmem:[#allocation1 + $0x21] ss:$4 sm:$0xff] %v2864_v5  ;;  %v3201_v56 = vpop.permute.xlu1 %1304 }
 0x2f8   : > { %1415 = vst [vmem:[#allocation1 + $0x22] ss:$4 sm:$0xff] %v2922_v46 }
 0x2f9   : > { %1416 = vst [vmem:[#allocation1 + $0x23] ss:$4 sm:$0xff] %v2871_v17 }
 0x2fa   : > { %1552 = vst.msk [vmem:[%s2455_s5 + $0x58] sm:$0xff] %vm433_vm0, %v1408_v37 }
 0x2fc   : > { %v1427_v16 = vld.sshfl [vmem:[#allocation1] sm:$0xff pattern:$0x73625140] }
 0x2fd   : > { %1429 = vst [vmem:[#allocation1] ss:$4 sm:$0xff] %v2632_v51  ;;  %v3224_v51 = vpop.permute.xlu2 %1330 }
 0x2fe   : > { %1430 = vst [vmem:[#allocation1 + $0x1] ss:$4 sm:$0xff] %v2696_v14  ;;  %v3213_v26 = vpop.permute.xlu0 %1332 }
 0x2ff   : > { %1431 = vst [vmem:[#allocation1 + $0x2] ss:$4 sm:$0xff] %v2639_v6  ;;  %v3216_v5 = vpop.permute.xlu1 %1328 }
 0x300   : > { %v1418_v17 = vld.sshfl [vmem:[#allocation1 + $0x20] sm:$0xff pattern:$0x73625140]  ;;  %1432 = vst [vmem:[#allocation1 + $0x3] ss:$4 sm:$0xff] %v2683_v62 }
 0x301   : > { %1426 = vst [vmem:[#allocation1 + $0x23] ss:$4 sm:$0xff] %v3145_v20  ;;  %v3491_v20 = vld [vmem:[#allocation7_spill] sm:$0xff] }
 0x302   : > { %1423 = vst [vmem:[#allocation1 + $0x20] ss:$4 sm:$0xff] %v3129_v58 }
 0x303   : > { %1554 = vst.msk [vmem:[%s2455_s5 + $0x68] sm:$0xff] %vm433_vm0, %v1418_v17  ;;  %v3504_v17 = vld [vmem:[#allocation17_spill] sm:$0xff] }
 0x304   : > { %1424 = vst [vmem:[#allocation1 + $0x21] ss:$4 sm:$0xff] %v3137_v61 }
 0x305   : > { %1555 = vst.msk [vmem:[%s2455_s5 + $0x70] sm:$0xff] %vm433_vm0, %v1427_v16  ;;  %v3239_v54 = vpop.permute.xlu2 %1336 }
 0x306   : > { %1425 = vst [vmem:[#allocation1 + $0x22] ss:$4 sm:$0xff] %v1275_v27  ;;  %v3228_v6 = vpop.permute.xlu0 %1338  ;;  %v3493_v27 = vld [vmem:[#allocation19_spill] sm:$0xff] }
 0x307   : > { %v1437_v14 = vld.sshfl [vmem:[#allocation1] sm:$0xff pattern:$0x73625140]  ;;  %v3230_v46 = vpop.permute.xlu1 %1334 }
 0x308   : > { %1439 = vst [vmem:[#allocation1] ss:$4 sm:$0xff] %v3030_v8 }
 0x309   : > { %1440 = vst [vmem:[#allocation1 + $0x1] ss:$4 sm:$0xff] %v3074_v57 }
 0x30a   : > { %1441 = vst [vmem:[#allocation1 + $0x2] ss:$4 sm:$0xff] %v2930_v28 }
 0x30b   : > { %1442 = vst [vmem:[#allocation1 + $0x3] ss:$4 sm:$0xff] %v3070_v22 }
 0x30c   : > { %1557 = vst.msk [vmem:[%s2455_s5 + $0x80] sm:$0xff] %vm433_vm0, %v1437_v14 }
 0x30d   : > { %v1428_v62 = vld.sshfl [vmem:[#allocation1 + $0x20] sm:$0xff pattern:$0x73625140] }
 0x30e   : > { %1433 = vst [vmem:[#allocation1 + $0x20] ss:$4 sm:$0xff] %v2723_v29  ;;  %v1646_v58 = vpop.permute.xlu0 %1645  ;;  %v1650_v29 = vpop.permute.xlu2 %1649 }
 0x30f   : > { %1434 = vst [vmem:[#allocation1 + $0x21] ss:$4 sm:$0xff] %v2664_v40  ;;  %v3242_v61 = vpop.permute.xlu1 %1340 }
 0x310   : > { %1435 = vst [vmem:[#allocation1 + $0x22] ss:$4 sm:$0xff] %v2710_v4 }
 0x311   : > { %1436 = vst [vmem:[#allocation1 + $0x23] ss:$4 sm:$0xff] %v2750_v38 }
 0x312   : > { %v1447_v28 = vld.sshfl [vmem:[#allocation1] sm:$0xff pattern:$0x73625140]  ;;  %1556 = vst.msk [vmem:[%s2455_s5 + $0x78] sm:$0xff] %vm433_vm0, %v1428_v62 }
 0x313   : > { %1452 = vst [vmem:[#allocation1 + $0x3] ss:$4 sm:$0xff] %v2916_v30 }
 0x314   : > { %1449 = vst [vmem:[#allocation1] ss:$4 sm:$0xff] %v2891_v50 }
 0x315   : > { %1450 = vst [vmem:[#allocation1 + $0x1] ss:$4 sm:$0xff] %v2909_v2 }
 0x316   : > { %1451 = vst [vmem:[#allocation1 + $0x2] ss:$4 sm:$0xff] %v2953_v21  ;;  %v1652_v40 = vpop.permute.xlu0 %1651  ;;  %v1656_v50 = vpop.permute.xlu2 %1655 }
 0x317   : > { %1559 = vst.msk [vmem:[%s2455_s5 + $0x90] sm:$0xff] %vm433_vm0, %v1447_v28  ;;  %v1648_v4 = vpop.permute.xlu1 %1647 }
 0x318   : > { %v1438_v8 = vld.sshfl [vmem:[#allocation1 + $0x20] sm:$0xff pattern:$0x73625140]  ;;  %1738 = vst.msk [vmem:[%s2455_s5 + $0x20] sm:$0xff] %vm1733_vm8, %v1646_v58 }
 0x319   : > { %1443 = vst [vmem:[#allocation1 + $0x20] ss:$4 sm:$0xff] %v3084_v59 }
 0x31a   : > { %1444 = vst [vmem:[#allocation1 + $0x21] ss:$4 sm:$0xff] %v2961_v7 }
 0x31b   : > { %1445 = vst [vmem:[#allocation1 + $0x22] ss:$4 sm:$0xff] %v3081_v25 }
 0x31c   : > { %1446 = vst [vmem:[#allocation1 + $0x23] ss:$4 sm:$0xff] %v3092_v60 }
 0x31d   : > { %1558 = vst.msk [vmem:[%s2455_s5 + $0x88] sm:$0xff] %vm433_vm0, %v1438_v8  ;;  %v1457_v38 = vld.sshfl [vmem:[#allocation1] sm:$0xff pattern:$0x73625140] }
 0x31e   : > { %1460 = vst [vmem:[#allocation1 + $0x1] ss:$4 sm:$0xff] %v3165_v24  ;;  %v1658_v2 = vpop.permute.xlu0 %1657  ;;  %v1662_v7 = vpop.permute.xlu2 %1661 }
 0x31f   : > { %1459 = vst [vmem:[#allocation1] ss:$4 sm:$0xff] %v3170_v33  ;;  %v1654_v30 = vpop.permute.xlu1 %1653 }
 0x320   : > { %1462 = vst [vmem:[#allocation1 + $0x3] ss:$4 sm:$0xff] %v3188_v42  ;;  %v3498_v42 = vld [vmem:[#allocation12_spill] sm:$0xff] }
 0x321   : > { %1561 = vst.msk [vmem:[%s2455_s5 + $0xa0] sm:$0xff] %vm433_vm0, %v1457_v38 }
 0x322   : > { %1461 = vst [vmem:[#allocation1 + $0x2] ss:$4 sm:$0xff] %v3186_v43 }
 0x323   : > { %v1448_v21 = vld.sshfl [vmem:[#allocation1 + $0x20] sm:$0xff pattern:$0x73625140]  ;;  %1740 = vst.msk [vmem:[%s2455_s5 + $0x30] sm:$0xff] %vm1733_vm8, %v1650_v29 }
 0x324   : > { %1455 = vst [vmem:[#allocation1 + $0x22] ss:$4 sm:$0xff] %v2944_v47  ;;  %v3488_v47 = vld [vmem:[#allocation6_spill] sm:$0xff] }
 0x325   : > { %1453 = vst [vmem:[#allocation1 + $0x20] ss:$4 sm:$0xff] %v2937_v13  ;;  %v3487_v13 = vld [vmem:[#allocation3_spill] sm:$0xff] }
 0x326   : > { %1454 = vst [vmem:[#allocation1 + $0x21] ss:$4 sm:$0xff] %v2988_v55  ;;  %v1664_v57 = vpop.permute.xlu0 %1663  ;;  %v1668_v55 = vpop.permute.xlu2 %1667 }
 0x327   : > { %1456 = vst [vmem:[#allocation1 + $0x23] ss:$4 sm:$0xff] %v2972_v12  ;;  %v1660_v59 = vpop.permute.xlu1 %1659 }
 0x328   : > { %1560 = vst.msk [vmem:[%s2455_s5 + $0x98] sm:$0xff] %vm433_vm0, %v1448_v21 }
 0x329   : > { %v1467_v22 = vld.sshfl [vmem:[#allocation1] sm:$0xff pattern:$0x73625140]  ;;  %1739 = vst.msk [vmem:[%s2455_s5 + $0x28] sm:$0xff] %vm1733_vm8, %v1648_v4 }
 0x32a   : > { %1469 = vst [vmem:[#allocation1] ss:$4 sm:$0xff] %v2644_v34 }
 0x32b   : > { %1470 = vst [vmem:[#allocation1 + $0x1] ss:$4 sm:$0xff] %v2690_v18 }
 0x32c   : > { %1471 = vst [vmem:[#allocation1 + $0x2] ss:$4 sm:$0xff] %v3487_v13 }
 0x32d   : > { %1472 = vst [vmem:[#allocation1 + $0x3] ss:$4 sm:$0xff] %v3488_v47 }
 0x32e   : > { %1563 = vst.msk [vmem:[%s2455_s5 + $0xb0] sm:$0xff] %vm433_vm0, %v1467_v22  ;;  %v1458_v12 = vld.sshfl [vmem:[#allocation1 + $0x20] sm:$0xff pattern:$0x73625140]  ;;  %v1670_v34 = vpop.permute.xlu0 %1669  ;;  %v1674_v18 = vpop.permute.xlu2 %1673 }
 0x32f   : > { %1463 = vst [vmem:[#allocation1 + $0x20] ss:$4 sm:$0xff] %v3181_v32  ;;  %v1666_v25 = vpop.permute.xlu1 %1665  ;;  %v3494_v32 = vld [vmem:[#allocation13_spill] sm:$0xff] }
 0x330   : > { %1465 = vst [vmem:[#allocation1 + $0x22] ss:$4 sm:$0xff] %v3207_v41  ;;  %v3502_v41 = vld [vmem:[#allocation11_spill] sm:$0xff] }
 0x331   : > { %1562 = vst.msk [vmem:[%s2455_s5 + $0xa8] sm:$0xff] %vm433_vm0, %v1458_v12 }
 0x332   : > { %1464 = vst [vmem:[#allocation1 + $0x21] ss:$4 sm:$0xff] %v3201_v56  ;;  %v3501_v56 = vld [vmem:[#allocation15_spill] sm:$0xff] }
 0x333   : > { %1466 = vst [vmem:[#allocation1 + $0x23] ss:$4 sm:$0xff] %v3197_v39  ;;  %v3500_v39 = vld [vmem:[#allocation10_spill] sm:$0xff] }
 0x334   : > { %1741 = vst.msk [vmem:[%s2455_s5 + $0x38] sm:$0xff] %vm1733_vm8, %v1652_v40  ;;  %v1477_v24 = vld.sshfl [vmem:[#allocation1] sm:$0xff pattern:$0x73625140] }
 0x335   : > { %1743 = vst.msk [vmem:[%s2455_s5 + $0x48] sm:$0xff] %vm1733_vm8, %v1656_v50 }
 0x336   : > { %1742 = vst.msk [vmem:[%s2455_s5 + $0x40] sm:$0xff] %vm1733_vm8, %v1654_v30  ;;  %v1676_v11 = vpop.permute.xlu0 %1675  ;;  %v1680_v31 = vpop.permute.xlu2 %1679 }
 0x337   : > { %1744 = vst.msk [vmem:[%s2455_s5 + $0x50] sm:$0xff] %vm1733_vm8, %v1658_v2  ;;  %v1672_v60 = vpop.permute.xlu1 %1671 }
 0x338   : > { %1746 = vst.msk [vmem:[%s2455_s5 + $0x60] sm:$0xff] %vm1733_vm8, %v1662_v7 }
 0x339   : > { %1745 = vst.msk [vmem:[%s2455_s5 + $0x58] sm:$0xff] %vm1733_vm8, %v1660_v59 }
 0x33a   : > { %v1468_v23 = vld.sshfl [vmem:[#allocation1 + $0x20] sm:$0xff pattern:$0x73625140]  ;;  %1747 = vst.msk [vmem:[%s2455_s5 + $0x68] sm:$0xff] %vm1733_vm8, %v1664_v57 }
 0x33b   : > { %1473 = vst [vmem:[#allocation1 + $0x20] ss:$4 sm:$0xff] %v3489_v0 }
 0x33c   : > { %1474 = vst [vmem:[#allocation1 + $0x21] ss:$4 sm:$0xff] %v3490_v49 }
 0x33d   : > { %1475 = vst [vmem:[#allocation1 + $0x22] ss:$4 sm:$0xff] %v3491_v20 }
 0x33e   : > { %1476 = vst [vmem:[#allocation1 + $0x23] ss:$4 sm:$0xff] %v3492_v9  ;;  %v1682_v35 = vpop.permute.xlu0 %1681  ;;  %v1686_v44 = vpop.permute.xlu2 %1685 }
 0x33f   : > { %1564 = vst.msk [vmem:[%s2455_s5 + $0xb8] sm:$0xff] %vm433_vm0, %v1468_v23  ;;  %v1678_v1 = vpop.permute.xlu1 %1677 }
 0x340   : > { %1749 = vst.msk [vmem:[%s2455_s5 + $0x78] sm:$0xff] %vm1733_vm8, %v1668_v55 }
 0x341   : > { %1748 = vst.msk [vmem:[%s2455_s5 + $0x70] sm:$0xff] %vm1733_vm8, %v1666_v25 }
 0x342   : > { %1750 = vst.msk [vmem:[%s2455_s5 + $0x80] sm:$0xff] %vm1733_vm8, %v1670_v34 }
 0x343   : > { %1752 = vst.msk [vmem:[%s2455_s5 + $0x90] sm:$0xff] %vm1733_vm8, %v1674_v18 }
 0x344   : > { %1751 = vst.msk [vmem:[%s2455_s5 + $0x88] sm:$0xff] %vm1733_vm8, %v1672_v60 }
 0x345   : > { %1753 = vst.msk [vmem:[%s2455_s5 + $0x98] sm:$0xff] %vm1733_vm8, %v1676_v11  ;;  %v1478_v33 = vld.sshfl [vmem:[#allocation1 + $0x20] sm:$0xff pattern:$0x73625140] }
 0x346   : > { %1755 = vst.msk [vmem:[%s2455_s5 + $0xa8] sm:$0xff] %vm1733_vm8, %v1680_v31  ;;  %v1688_v45 = vpop.permute.xlu0 %1687  ;;  %v1692_v37 = vpop.permute.xlu2 %1691 }
 0x347   : > { %1754 = vst.msk [vmem:[%s2455_s5 + $0xa0] sm:$0xff] %vm1733_vm8, %v1678_v1  ;;  %v1684_v48 = vpop.permute.xlu1 %1683 }
 0x348   : > { %1756 = vst.msk [vmem:[%s2455_s5 + $0xb0] sm:$0xff] %vm1733_vm8, %v1682_v35 }
 0x349   : > { %1565 = vst.msk [vmem:[%s2455_s5 + $0xc0] sm:$0xff] %vm433_vm0, %v1477_v24 }
 0x34a   : > { %1758 = vst.msk [vmem:[%s2455_s5 + $0xc0] sm:$0xff] %vm1733_vm8, %v1686_v44 }
 0x34b   : > { %1479 = vst [vmem:[#allocation1] ss:$4 sm:$0xff] %v3036_v15  ;;  %v3495_v15 = vld [vmem:[#allocation18_spill] sm:$0xff] }
 0x34c   : > { %1480 = vst [vmem:[#allocation1 + $0x1] ss:$4 sm:$0xff] %v2998_v19 }
 0x34d   : > { %1481 = vst [vmem:[#allocation1 + $0x2] ss:$4 sm:$0xff] %v3089_v10  ;;  %v3496_v10 = vld [vmem:[#allocation16_spill] sm:$0xff] }
 0x34e   : > { %1482 = vst [vmem:[#allocation1 + $0x3] ss:$4 sm:$0xff] %v3493_v27  ;;  %v1694_v16 = vpop.permute.xlu0 %1693  ;;  %v1698_v28 = vpop.permute.xlu2 %1697 }
 0x34f   : > { %1757 = vst.msk [vmem:[%s2455_s5 + $0xb8] sm:$0xff] %vm1733_vm8, %v1684_v48  ;;  %v1690_v19 = vpop.permute.xlu1 %1689 }
 0x350   : > { %1566 = vst.msk [vmem:[%s2455_s5 + $0xc8] sm:$0xff] %vm433_vm0, %v1478_v33 }
 0x351   : > { %1759 = vst.msk [vmem:[%s2455_s5 + $0xc8] sm:$0xff] %vm1733_vm8, %v1688_v45 }
 0x352   : > { %1483 = vst [vmem:[#allocation1 + $0x20] ss:$4 sm:$0xff] %v3494_v32 }
 0x353   : > { %1484 = vst [vmem:[#allocation1 + $0x21] ss:$4 sm:$0xff] %v3495_v15 }
 0x354   : > { %1485 = vst [vmem:[#allocation1 + $0x22] ss:$4 sm:$0xff] %v3108_v53 }
 0x355   : > { %1486 = vst [vmem:[#allocation1 + $0x23] ss:$4 sm:$0xff] %v3496_v10  ;;  %v1487_v43 = vld.sshfl [vmem:[#allocation1] sm:$0xff pattern:$0x73625140] }
 0x356   : > { %1567 = vst.msk [vmem:[%s2455_s5 + $0xd0] sm:$0xff] %vm433_vm0, %v1487_v43 }
 0x357   : > { %1760 = vst.msk [vmem:[%s2455_s5 + $0xd0] sm:$0xff] %vm1733_vm8, %v1690_v19  ;;  %v1696_v62 = vpop.permute.xlu1 %1695 }
 0x358   : > { %1489 = vst [vmem:[#allocation1] ss:$4 sm:$0xff] %v3497_v63 }
 0x359   : > { %1490 = vst [vmem:[#allocation1 + $0x1] ss:$4 sm:$0xff] %v3498_v42 }
 0x35a   : > { %1491 = vst [vmem:[#allocation1 + $0x2] ss:$4 sm:$0xff] %v3499_v36 }
 0x35b   : > { %1492 = vst [vmem:[#allocation1 + $0x3] ss:$4 sm:$0xff] %v3500_v39 }
 0x35c   : > { %v1488_v53 = vld.sshfl [vmem:[#allocation1 + $0x20] sm:$0xff pattern:$0x73625140] }
 0x35d   : > { %1568 = vst.msk [vmem:[%s2455_s5 + $0xd8] sm:$0xff] %vm433_vm0, %v1488_v53 }
 0x35e   : > { %1761 = vst.msk [vmem:[%s2455_s5 + $0xd8] sm:$0xff] %vm1733_vm8, %v1692_v37 }
 0x35f   : > { %1493 = vst [vmem:[#allocation1 + $0x20] ss:$4 sm:$0xff] %v3501_v56 }
 0x360   : > { %1494 = vst [vmem:[#allocation1 + $0x21] ss:$4 sm:$0xff] %v3502_v41 }
 0x361   : > { %1495 = vst [vmem:[#allocation1 + $0x22] ss:$4 sm:$0xff] %v3503_v3 }
 0x362   : > { %1496 = vst [vmem:[#allocation1 + $0x23] ss:$4 sm:$0xff] %v3504_v17  ;;  %v1497_v14 = vld.sshfl [vmem:[#allocation1] sm:$0xff pattern:$0x73625140] }
 0x363   : > { %1569 = vst.msk [vmem:[%s2455_s5 + $0xe0] sm:$0xff] %vm433_vm0, %v1497_v14 }
 0x364   : > { %1762 = vst.msk [vmem:[%s2455_s5 + $0xe0] sm:$0xff] %vm1733_vm8, %v1694_v16 }
 0x365   : > { %1499 = vst [vmem:[#allocation1] ss:$4 sm:$0xff] %v3148_v52 }
 0x366   : > { %1500 = vst [vmem:[#allocation1 + $0x1] ss:$4 sm:$0xff] %v3216_v5 }
 0x367   : > { %1501 = vst [vmem:[#allocation1 + $0x2] ss:$4 sm:$0xff] %v3224_v51 }
 0x368   : > { %1502 = vst [vmem:[#allocation1 + $0x3] ss:$4 sm:$0xff] %v3213_v26  ;;  %v1700_v26 = vpop.permute.xlu0 %1699 }
 0x369   : > { %v1498_v58 = vld.sshfl [vmem:[#allocation1 + $0x20] sm:$0xff pattern:$0x73625140] }
 0x36a   : > { %1570 = vst.msk [vmem:[%s2455_s5 + $0xe8] sm:$0xff] %vm433_vm0, %v1498_v58 }
 0x36b   : > { %1763 = vst.msk [vmem:[%s2455_s5 + $0xe8] sm:$0xff] %vm1733_vm8, %v1696_v62 }
 0x36c   : > { %1503 = vst [vmem:[#allocation1 + $0x20] ss:$4 sm:$0xff] %v3230_v46 }
 0x36d   : > { %1504 = vst [vmem:[#allocation1 + $0x21] ss:$4 sm:$0xff] %v3239_v54 }
 0x36e   : > { %1505 = vst [vmem:[#allocation1 + $0x22] ss:$4 sm:$0xff] %v3228_v6 }
 0x36f   : > { %v1507_v52 = vld.sshfl [vmem:[#allocation1] sm:$0xff pattern:$0x73625140]  ;;  %1506 = vst [vmem:[#allocation1 + $0x23] ss:$4 sm:$0xff] %v3242_v61 }
 0x370   : > { %1571 = vst.msk [vmem:[%s2455_s5 + $0xf0] sm:$0xff] %vm433_vm0, %v1507_v52 }
 0x371   : > { %1764 = vst.msk [vmem:[%s2455_s5 + $0xf0] sm:$0xff] %vm1733_vm8, %v1698_v28 }
 0x376   : > { %v1508_v5 = vld.sshfl [vmem:[#allocation1 + $0x20] sm:$0xff pattern:$0x73625140] }
 0x377   : > { %1572 = vst.msk [vmem:[%s2455_s5 + $0xf8] sm:$0xff] %vm433_vm0, %v1508_v5 }
 0x378   : > { %1765 = vst.msk [vmem:[%s2455_s5 + $0xf8] sm:$0xff] %vm1733_vm8, %v1700_v26 }
 0x379 PF: > { %s13_s14 = sadd.s32 1, %s1961_s14   ;;  %s3505_s12 = smov %s1957_s13 }
 0x37a   : > { %p10_p5 = scmp.ge.s32.totalorder %s13_s14, 4   ;;  %s3506_s13 = smov %s3508_s15 }
 0x37c   :  { %12 = sbr.rel (!%p10_p5) target bundleno = 2 (0x2), region = 72 }

</bundles_post_ra>
